<compile_context>
chip_gen: v7x
topology: tpu7x:2x2x1
jax: 0.10.0
libtpu: 0.0.40
codegen_flags: <defaults>
</compile_context>

<pallas_src>
import jax
import jax.numpy as jnp
from jax.experimental import pallas as pl
from jax.experimental.pallas import tpu as pltpu


def attention_head_kernel(feat_ref, mask_ref, ww_ref, wb_ref, vw_ref, vb_ref,
                          out_ref):
    # feat_ref : (TB, S, H)  feature tile, NATIVE input dtype (cast in-kernel)
    # mask_ref : (TB, S, 1)  attention mask tile (f32, sublane-major in S)
    # ww_ref   : (H, D)      W.weight^T (compute dtype)
    # wb_ref   : (1, D)      W.bias (f32)
    # vw_ref   : (D, 1)      V.weight (compute dtype)
    # vb_ref   : (1,)        V.bias (f32 scalar, SMEM)
    # out_ref  : (TB, 1, H)  context vectors (f32)
    tb, s, h = feat_ref.shape
    cdtype = ww_ref.dtype

    feat_in = feat_ref[...]                               # (TB, S, H) native dtype
    # In-kernel cast to the compute dtype; with S % 8 == 0 the reshape is a
    # layout no-op, so the whole tile feeds the MXU M dimension.
    flat = feat_in.astype(cdtype).reshape(tb * s, h)      # (TB*S, H)

    # att = tanh(W(features))  -- single MXU matmul, f32 accumulation.
    att = jnp.tanh(
        jnp.dot(flat, ww_ref[...], preferred_element_type=jnp.float32)
        + wb_ref[...])                                    # (TB*S, D) f32

    # score = V(att)  -- ONE (TB*S, D) @ (D, 1) MXU matvec (single weight load).
    score = (jnp.dot(att.astype(cdtype), vw_ref[...],
                     preferred_element_type=jnp.float32)
             + vb_ref[0]).reshape(tb, s, 1)               # (TB, S, 1) f32

    # score[attention_mask == 0] = -10000.0
    mask = mask_ref[...]                                  # (TB, S, 1) f32
    score = jnp.where(mask == 0.0, -10000.0, score)

    # softmax over the sequence (sublane) axis.
    m = jnp.max(score, axis=1, keepdims=True)             # (TB, 1, 1)
    e = jnp.exp(score - m)
    inv = pl.reciprocal(jnp.sum(e, axis=1, keepdims=True), approx=True)
    # NOTE: the trailing `* mask` is what guarantees masked / padded positions
    # contribute exactly zero to the context sum -- do not drop it.
    w = e * inv * mask                                    # (TB, S, 1) f32

    # context_vector = sum_s (softmax * mask * features)
    #   -> VPU lane-broadcast multiply + sublane reduce over S (keeps the MXU
    #      free; the old 'bqs,bsh->bqh' einsum unrolled into TB MXU passes).
    out_ref[...] = jnp.sum(w * feat_in.astype(jnp.float32), axis=1,
                           keepdims=True)                 # (TB, 1, H) f32


def _tpu_info():
    """(vmem_capacity_bytes, tensorcores_per_chip) with conservative fallbacks."""
    vmem_cap = 64 * 1024 * 1024        # conservative: v7x per-TensorCore VMEM
    cores = 2                          # conservative: assume 2 TCs (v7x)
    try:
        info = pltpu.get_tpu_info()
        vmem_cap = int(getattr(info, "vmem_capacity_bytes", vmem_cap))
        for name in ("num_cores", "core_count", "num_tensorcores",
                     "tensorcore_count", "cores_per_chip"):
            val = getattr(info, name, None)
            if val:
                cores = int(val)
                break
    except Exception:
        pass
    return vmem_cap, max(1, cores)


def _step_vmem_bytes(tb, S, H, D, feat_itemsize, compute_itemsize):
    """Per-grid-step VMEM working set: double-buffered blocks + intermediates."""
    feat_blocks = 2 * tb * S * H * feat_itemsize      # double-buffered feature tile
    feat_cast = tb * S * H * compute_itemsize         # in-kernel cast fed to the MXU
    att_f32 = tb * S * D * 4                          # f32 MXU accumulation (tanh out)
    att_cast = tb * S * D * compute_itemsize          # cast for the V matvec
    wprod_f32 = tb * S * H * 4                        # f32 (w * features) before reduce
    mask_blocks = 2 * tb * S * 4                      # double-buffered mask tile
    out_blocks = 2 * tb * H * 4                       # double-buffered output tile
    vectors = 4 * tb * S * 4                          # score / e / w / scratch vectors
    weights = 2 * (H * D * compute_itemsize + D * 4 + D * compute_itemsize)
    return (feat_blocks + feat_cast + att_f32 + att_cast + wprod_f32
            + mask_blocks + out_blocks + vectors + weights)


def _pick_batch_tile(B, S, H, D, feat_itemsize, compute_itemsize,
                     vmem_cap, num_cores):
    """Largest divisor of B whose per-step working set fits ~60% of VMEM while
    leaving >=2 grid steps per TensorCore (when B allows) for DMA pipelining."""
    budget = int(vmem_cap * 0.6)

    def fits(tb):
        return _step_vmem_bytes(tb, S, H, D, feat_itemsize,
                                compute_itemsize) <= budget

    divisors = [d for d in range(1, B + 1) if B % d == 0]
    target_steps = min(B, max(2, 2 * num_cores))
    best = 1
    for d in divisors:
        if fits(d) and B // d >= target_steps:
            best = max(best, d)
    if best == 1:
        # B too small (or prime) relative to the step target: take the largest
        # divisor that fits VMEM.
        for d in divisors:
            if fits(d):
                best = max(best, d)
    return best


def attention_head_pooling(features, attention_mask, ww, wb, vw, vb,
                           *, compute_dtype=jnp.bfloat16, batch_tile=None):
    """AttentionHead forward: features (B,S,H), mask (B,S) -> context (B,H)."""
    B, S, H = features.shape
    D = ww.shape[1]

    # Keep S a multiple of 8 so in-kernel reshapes stay layout no-ops; padded
    # positions carry mask == 0, so they contribute nothing to the result.
    Sp = -(-S // 8) * 8
    mask = attention_mask.astype(jnp.float32)[..., None]       # (B, S, 1), tiny
    if Sp != S:
        features = jnp.pad(features, ((0, 0), (0, Sp - S), (0, 0)))
        mask = jnp.pad(mask, ((0, 0), (0, Sp - S), (0, 0)))

    vmem_cap, num_cores = _tpu_info()
    feat_item = jnp.dtype(features.dtype).itemsize
    comp_item = jnp.dtype(compute_dtype).itemsize
    if batch_tile is None:
        tb = _pick_batch_tile(B, Sp, H, D, feat_item, comp_item,
                              vmem_cap, num_cores)
    else:
        tb = max(1, min(int(batch_tile), B))
        while B % tb:          # keep tb a divisor of B (no ragged / padded tile)
            tb -= 1
    n_steps = B // tb

    # vmem limit = measured per-step working set + ~25% headroom, capped at the
    # chip's physical VMEM (64 MiB per TC on v7x, 128 MiB on v5e/v6e).
    ws = _step_vmem_bytes(tb, Sp, H, D, feat_item, comp_item)
    vmem_limit = int(min(vmem_cap, max(int(ws * 1.25) + (4 << 20), 16 << 20)))

    ww_c = ww.astype(compute_dtype)                    # (H, D)
    wb_c = wb.reshape(1, D).astype(jnp.float32)        # (1, D)
    vw_c = vw.reshape(D, 1).astype(compute_dtype)      # (D, 1)
    vb_c = vb.reshape(1).astype(jnp.float32)           # (1,)  -> SMEM scalar

    out = pl.pallas_call(
        attention_head_kernel,
        out_shape=jax.ShapeDtypeStruct((B, 1, H), jnp.float32),
        grid_spec=pltpu.PrefetchScalarGridSpec(
            num_scalar_prefetch=0,
            grid=(n_steps,),
            in_specs=[
                # Features read in their NATIVE dtype (no wrapper cast/pad pass).
                # TODO(synk): sweep pipeline_mode=pl.Buffered(3) here on
                # v5e/v6e if profiling shows exposed feature DMA.
                pl.BlockSpec((tb, Sp, H), lambda b: (b, 0, 0)),
                pl.BlockSpec((tb, Sp, 1), lambda b: (b, 0, 0)),     # mask
                pl.BlockSpec((H, D), lambda b: (0, 0)),             # W.weight^T
                pl.BlockSpec((1, D), lambda b: (0, 0)),             # W.bias
                pl.BlockSpec((D, 1), lambda b: (0, 0)),             # V.weight
                pl.BlockSpec(memory_space=pltpu.MemorySpace.SMEM),  # V.bias
            ],
            out_specs=pl.BlockSpec((tb, 1, H), lambda b: (b, 0, 0)),
        ),
        compiler_params=pltpu.CompilerParams(
            dimension_semantics=("parallel",),
            vmem_limit_bytes=vmem_limit,
        ),
    )(features, mask, ww_c, wb_c, vw_c, vb_c)

    # Drop the unit q-dim (free reshape in XLA).
    return out.reshape(B, H)


def nlp_pooling_forward(last_hidden_state, attention_mask, params,
                        pooling_name="AttentionHead",
                        compute_dtype=jnp.bfloat16):
    """NLPPooling.forward for pooling_name in {'AttentionHead', 'CLS'}."""
    if pooling_name == "AttentionHead":
        return attention_head_pooling(last_hidden_state, attention_mask,
                                      params["ww"], params["wb"],
                                      params["vw"], params["vb"],
                                      compute_dtype=compute_dtype)
    elif pooling_name == "CLS":
        return last_hidden_state[:, 0, :]
    else:
        # TODO(synk): MeanPooling/MaxPooling/MinPooling/GeMText classes are not
        # defined in the provided module source; only AttentionHead/CLS paths
        # are implemented here.
        return last_hidden_state


def _reference(features, attention_mask, params):
    """Pure-JAX (f32, highest precision) reference of the PyTorch forward."""
    mask = attention_mask.astype(jnp.float32)[..., None]              # (B,S,1)
    att = jnp.tanh(
        jnp.einsum("bsh,hd->bsd", features, params["ww"],
                   precision=jax.lax.Precision.HIGHEST) + params["wb"])
    score = jnp.einsum("bsd,do->bso", att, params["vw"],
                       precision=jax.lax.Precision.HIGHEST) + params["vb"]
    score = jnp.where(mask == 0.0, -10000.0, score)
    w = jax.nn.softmax(score, axis=1)
    return jnp.sum(w * mask * features, axis=1)                       # (B,H)


if __name__ == "__main__":
    B, S = 16, 64
    in_features = 128    # encoder hidden size H
    hidden_dim = 128     # AttentionHead middle dim D (multiple of 128 keeps the
                         # (TB*S, D) intermediates lane-dense)

    key = jax.random.PRNGKey(0)
    k_feat, k_ww, k_wb, k_vw, k_vb = jax.random.split(key, 5)

    features = jax.random.normal(k_feat, (B, S, in_features), jnp.float32)
    # mix of fully-valid and partially-padded sequences
    lengths = jnp.maximum(1, S - 4 * jnp.arange(B))
    attention_mask = (jnp.arange(S)[None, :] < lengths[:, None]).astype(jnp.int32)

    # PyTorch Linear default init: U(-1/sqrt(fan_in), +1/sqrt(fan_in))
    bw = 1.0 / jnp.sqrt(in_features)
    bv = 1.0 / jnp.sqrt(hidden_dim)
    params = {
        # W: Linear(in_features, hidden_dim) stored transposed for x @ W^T
        "ww": jax.random.uniform(k_ww, (in_features, hidden_dim), jnp.float32,
                                 -bw, bw),
        "wb": jax.random.uniform(k_wb, (hidden_dim,), jnp.float32, -bw, bw),
        # V: Linear(hidden_dim, 1) stored transposed
        "vw": jax.random.uniform(k_vw, (hidden_dim, 1), jnp.float32, -bv, bv),
        "vb": jax.random.uniform(k_vb, (1,), jnp.float32, -bv, bv),
    }

    ref = _reference(features, attention_mask, params)

    # f32 compute path: validates kernel structure / semantics.
    out_f32 = nlp_pooling_forward(features, attention_mask, params,
                                  compute_dtype=jnp.float32)
    out_f32 = jax.block_until_ready(out_f32)
    assert out_f32.shape == (B, in_features)
    diff_f32 = float(jnp.max(jnp.abs(out_f32 - ref)))
    assert jnp.allclose(out_f32, ref, atol=2e-2, rtol=2e-2), (
        f"f32 path max abs diff {diff_f32}")

    # bf16 compute path (default / production): bf16 MXU matmuls with f32
    # accumulation; the mask/softmax/context multiply stay in f32.
    out_bf16 = nlp_pooling_forward(features, attention_mask, params)
    out_bf16 = jax.block_until_ready(out_bf16)
    assert out_bf16.shape == (B, in_features)
    diff_bf16 = float(jnp.max(jnp.abs(out_bf16 - ref)))
    assert jnp.allclose(out_bf16, ref, atol=5e-2, rtol=5e-2), (
        f"bf16 path max abs diff {diff_bf16}")

    print("KERNEL_OK")
</pallas_src>

<mosaic_0001>
module attributes {stable_mosaic.version = 11 : i64} {
  func.func @attention_head_kernel(%arg0: i32, %arg1: memref<4x64x128xf32, #tpu.memory_space<vmem>>, %arg2: memref<4x64x1xf32, #tpu.memory_space<vmem>>, %arg3: memref<128x128xf32, #tpu.memory_space<vmem>>, %arg4: memref<1x128xf32, #tpu.memory_space<vmem>>, %arg5: memref<128x1xf32, #tpu.memory_space<vmem>>, %arg6: memref<1xf32, #tpu.memory_space<smem>>, %arg7: memref<4x1x128xf32, #tpu.memory_space<vmem>>) attributes {dimension_semantics = [#tpu.dimension_semantics<parallel>], iteration_bounds = array<i64: 4>, scalar_prefetch = 0 : i64, scratch_operands = 0 : i64, tpu.core_type = #tpu.core_type<tc>, window_params = [{transform_indices = @transform_0, window_bounds = array<i64: 4, 64, 128>}, {transform_indices = @transform_1, window_bounds = array<i64: 4, 64, 1>}, {pipeline_mode = #tpu.pipeline_mode<synchronous>, transform_indices = @transform_2, window_bounds = array<i64: 128, 128>}, {pipeline_mode = #tpu.pipeline_mode<synchronous>, transform_indices = @transform_3, window_bounds = array<i64: 1, 128>}, {pipeline_mode = #tpu.pipeline_mode<synchronous>, transform_indices = @transform_4, window_bounds = array<i64: 128, 1>}, {transform_indices = @transform_5, window_bounds = array<i64: 1>}, {transform_indices = @transform_6, window_bounds = array<i64: 4, 1, 128>}]} {
    %c0 = arith.constant 0 : index
    %c0_0 = arith.constant 0 : index
    %c0_1 = arith.constant 0 : index
    %0 = vector.load %arg1[%c0, %c0_0, %c0_1] : memref<4x64x128xf32, #tpu.memory_space<vmem>>, vector<4x64x128xf32>
    %1 = vector.shape_cast %0 : vector<4x64x128xf32> to vector<256x128xf32>
    %c0_2 = arith.constant 0 : index
    %c0_3 = arith.constant 0 : index
    %2 = vector.load %arg3[%c0_2, %c0_3] : memref<128x128xf32, #tpu.memory_space<vmem>>, vector<128x128xf32>
    %cst = arith.constant dense<0.000000e+00> : vector<256x128xf32>
    %3 = tpu.matmul %1, %2, %cst {dimension_numbers = #tpu.dot_dimension_numbers<[1], [0], [0], [1], [0, 0, 1, 1], [], []>} : vector<256x128xf32>, vector<128x128xf32>, vector<256x128xf32> -> vector<256x128xf32>
    %c0_4 = arith.constant 0 : index
    %c0_5 = arith.constant 0 : index
    %4 = vector.load %arg4[%c0_4, %c0_5] : memref<1x128xf32, #tpu.memory_space<vmem>>, vector<1x128xf32>
    %5 = vector.broadcast %4 : vector<1x128xf32> to vector<256x128xf32>
    %6 = arith.addf %3, %5 : vector<256x128xf32>
    %7 = math.tanh %6 : vector<256x128xf32>
    %c0_6 = arith.constant 0 : index
    %c0_7 = arith.constant 0 : index
    %8 = vector.load %arg5[%c0_6, %c0_7] : memref<128x1xf32, #tpu.memory_space<vmem>>, vector<128x1xf32>
    %cst_8 = arith.constant dense<0.000000e+00> : vector<256x1xf32>
    %9 = tpu.matmul %7, %8, %cst_8 {dimension_numbers = #tpu.dot_dimension_numbers<[1], [0], [0], [1], [0, 0, 1, 1], [], []>} : vector<256x128xf32>, vector<128x1xf32>, vector<256x1xf32> -> vector<256x1xf32>
    %c0_9 = arith.constant 0 : index
    %10 = memref.load %arg6[%c0_9] : memref<1xf32, #tpu.memory_space<smem>>
    %11 = vector.broadcast %10 : f32 to vector<256x1xf32>
    %12 = arith.addf %9, %11 : vector<256x1xf32>
    %13 = vector.shape_cast %12 : vector<256x1xf32> to vector<4x64x1xf32>
    %c0_10 = arith.constant 0 : index
    %c0_11 = arith.constant 0 : index
    %c0_12 = arith.constant 0 : index
    %14 = vector.load %arg2[%c0_10, %c0_11, %c0_12] : memref<4x64x1xf32, #tpu.memory_space<vmem>>, vector<4x64x1xf32>
    %cst_13 = arith.constant 0.000000e+00 : f32
    %15 = vector.broadcast %cst_13 : f32 to vector<4x64x1xf32>
    %16 = arith.cmpf oeq, %14, %15 : vector<4x64x1xf32>
    %cst_14 = arith.constant -1.000000e+04 : f32
    %17 = vector.broadcast %cst_14 : f32 to vector<4x64x1xf32>
    %18 = arith.select %16, %17, %13 : vector<4x64x1xi1>, vector<4x64x1xf32>
    %cst_15 = arith.constant dense<0xFF800000> : vector<4x1xf32>
    %19 = vector.multi_reduction <maximumf>, %18, %cst_15 [1] : vector<4x64x1xf32> to vector<4x1xf32>
    %20 = vector.shape_cast %19 : vector<4x1xf32> to vector<4x1x1xf32>
    %21 = vector.broadcast %20 : vector<4x1x1xf32> to vector<4x64x1xf32>
    %22 = arith.subf %18, %21 : vector<4x64x1xf32>
    %23 = math.exp %22 : vector<4x64x1xf32>
    %cst_16 = arith.constant dense<0.000000e+00> : vector<4x1xf32>
    %24 = vector.multi_reduction <add>, %23, %cst_16 [1] : vector<4x64x1xf32> to vector<4x1xf32>
    %25 = vector.shape_cast %24 : vector<4x1xf32> to vector<4x1x1xf32>
    %26 = tpu.reciprocal %25 {approx = true} : vector<4x1x1xf32> -> vector<4x1x1xf32>
    %27 = vector.broadcast %26 : vector<4x1x1xf32> to vector<4x64x1xf32>
    %28 = arith.mulf %23, %27 : vector<4x64x1xf32>
    %29 = arith.mulf %28, %14 : vector<4x64x1xf32>
    %30 = vector.broadcast %29 : vector<4x64x1xf32> to vector<4x64x128xf32>
    %31 = arith.mulf %30, %0 : vector<4x64x128xf32>
    %cst_17 = arith.constant dense<0.000000e+00> : vector<4x128xf32>
    %32 = vector.multi_reduction <add>, %31, %cst_17 [1] : vector<4x64x128xf32> to vector<4x128xf32>
    %33 = vector.shape_cast %32 : vector<4x128xf32> to vector<4x1x128xf32>
    %c0_18 = arith.constant 0 : index
    %c0_19 = arith.constant 0 : index
    %c0_20 = arith.constant 0 : index
    %34 = vector.load %arg7[%c0_18, %c0_19, %c0_20] : memref<4x1x128xf32, #tpu.memory_space<vmem>>, vector<4x1x128xf32>
    tpu.vector_store %arg7[%c0_18, %c0_19, %c0_20], %33 {strides = array<i32>} : memref<4x1x128xf32, #tpu.memory_space<vmem>>, vector<4x1x128xf32>,
    return
  }
  func.func @transform_0(%arg0: i32) -> (i32, i32, i32) {
    %c0_i32 = arith.constant 0 : i32
    %c0_i32_0 = arith.constant 0 : i32
    %c0_i32_1 = arith.constant 0 : i32
    return %arg0, %c0_i32, %c0_i32_0 : i32, i32, i32
  }
  func.func @transform_1(%arg0: i32) -> (i32, i32, i32) {
    %c0_i32 = arith.constant 0 : i32
    %c0_i32_0 = arith.constant 0 : i32
    %c0_i32_1 = arith.constant 0 : i32
    return %arg0, %c0_i32, %c0_i32_0 : i32, i32, i32
  }
  func.func @transform_2(%arg0: i32) -> (i32, i32) {
    %c0_i32 = arith.constant 0 : i32
    %c0_i32_0 = arith.constant 0 : i32
    %c0_i32_1 = arith.constant 0 : i32
    return %c0_i32, %c0_i32_0 : i32, i32
  }
  func.func @transform_3(%arg0: i32) -> (i32, i32) {
    %c0_i32 = arith.constant 0 : i32
    %c0_i32_0 = arith.constant 0 : i32
    %c0_i32_1 = arith.constant 0 : i32
    return %c0_i32, %c0_i32_0 : i32, i32
  }
  func.func @transform_4(%arg0: i32) -> (i32, i32) {
    %c0_i32 = arith.constant 0 : i32
    %c0_i32_0 = arith.constant 0 : i32
    %c0_i32_1 = arith.constant 0 : i32
    return %c0_i32, %c0_i32_0 : i32, i32
  }
  func.func @transform_5(%arg0: i32) -> i32 {
    %c0_i32 = arith.constant 0 : i32
    %c0_i32_0 = arith.constant 0 : i32
    return %c0_i32 : i32
  }
  func.func @transform_6(%arg0: i32) -> (i32, i32, i32) {
    %c0_i32 = arith.constant 0 : i32
    %c0_i32_0 = arith.constant 0 : i32
    %c0_i32_1 = arith.constant 0 : i32
    return %arg0, %c0_i32, %c0_i32_0 : i32, i32, i32
  }
}

</mosaic_0001>

<bundles_post_ra>
// kernel: tpu_custom_call.1
= control target key start
LH: loop header
LB: loop body
LE: loop exit
PB: predicated region body
PF: predicated region fallthrough
CT: control target
= control target key end

     0   :  { %s3178_s0 = inlined_call_operand.vmem [shape: f32[16,64,128], index: 0, kind: input, shape index: {}]   ;;  %s3179_s1 = inlined_call_operand.vmem [shape: f32[16,64,1], index: 1, kind: input, shape index: {}]   ;;  %s3180_s2 = inlined_call_operand.vmem [shape: f32[128,128], index: 2, kind: input, shape index: {}]   ;;  %s3181_s3 = inlined_call_operand.vmem [shape: f32[1,128], index: 3, kind: input, shape index: {}]   ;;  %s3182_s4 = inlined_call_operand.vmem [shape: f32[128,1], index: 4, kind: input, shape index: {}]   ;;  %s3183_s5 = inlined_call_operand.<no memory space> [shape: f32[1], index: 5, kind: input, shape index: {}]   ;;  %s3184_s6 = inlined_call_operand.hbm [shape: f32[16,1,128], index: 6, kind: output, shape index: {}]  }
   0x1   :  { %11 = sst [smem:[#allocation2]] %s3183_s5 }
   0x2   :  { %12 = vsyncpa [#allocation4], 0 }
   0x3   :  { %14 = vsyncpa [#allocation4 + $0x1], 0  ;;  %s2260_s23 = smov 0   ;;  %s2262_s24 = smov 0  }
   0x4   :  { %s2264_s25 = smov 0   ;;  %s2266_s26 = smov 0  }
   0x5 LB: > { %s2281_s5 = sadd.s32 4294967295, %s2216_s26   ;;  %s1602_s27 = sadd.s32 4294967294, %s2216_s26   ;;  %s2216_s26 = sphi %s2266_s26, %s3246_s26   ;;  %s2212_s25 = sphi %s2264_s25, %s3245_s25   ;;  %s2208_s24 = sphi %s2262_s24, %s3244_s24   ;;  %s2204_s23 = sphi %s2260_s23, %s3243_s23  }
   0x6   : > { %s2285_s28 = sadd.s32 1, %s2216_s26   ;;  %s163_s29 = sadd.s32 1, %s2212_s25 }
   0x7   : > { %s160_s30 = ssub.s32 %s2216_s26, %s2285_s28  ;;  %p173_p0 = scmp.ne.s32.totalorder %s2212_s25, %s2208_s24 }
   0x8   : > { %p161_p1 = scmp.eq.s32.totalorder %s160_s30, 0  ;;  %p174_p2 = scmp.eq.s32.totalorder %s2281_s5, 3 }
   0x9   : > { %p179_p3 = scmp.ne.s32.totalorder %s2208_s24, %s2204_s23  ;;  %p180_p4 = scmp.eq.s32.totalorder %s1602_s27, 3 }
   0xa   : > { %s2296_s7 = scalar_select %p161_p1, %s2212_s25, %s163_s29  }
   0xb   : > { %p2298_p5 = por %p174_p2, %p173_p0  ;;  %p2302_p6 = por %p180_p4, %p179_p3 }
   0xc   : > { %p1605_p7 = scmp.ge.s32.totalorder %s2216_s26, 1  ;;  %p230_p8 = scmp.lt.s32.totalorder %s2216_s26, 5 }
   0xe   : > { %p231_p9 = pnand %p1605_p7, %p230_p8 }
  0x10   : > { %234 = sbr.rel (%p231_p9) target bundleno = 833 (0x341), region = 44 }
  0x17   : > { %v314_v0 = vld [vmem:[%s3180_s2] sm:$0xff]  ;;  %v315_v1 = vld [vmem:[%s3180_s2 + $0x8] sm:$0xff]  ;;  %v316_v2 = vld [vmem:[%s3180_s2 + $0x10] sm:$0xff]  ;;  %s1607_s16 = sshll.u32 %s2281_s5, 2  ;;  %s610_s12 = sld [smem:[#allocation2]]  ;;  %vm933_vm1 = vcmask 7168  }
  0x18   : > { %v1878_v3 = vpack.c.bf16 %v315_v1, %v314_v0  ;;  %v317_v4 = vld [vmem:[%s3180_s2 + $0x18] sm:$0xff]  ;;  %p268_p10 = scmp.lt.s32.totalorder %s1607_s16, 15  ;;  %v318_v6 = vld [vmem:[%s3180_s2 + $0x20] sm:$0xff]  ;;  %v319_v7 = vld [vmem:[%s3180_s2 + $0x28] sm:$0xff]  ;;  %s1621_s18 = sshll.u32 %s2281_s5, 6 }
  0x19   : > { %v1882_v5 = vpack.c.bf16 %v317_v4, %v316_v2  ;;  %v1886_v8 = vpack.c.bf16 %v319_v7, %v318_v6  ;;  %v320_v9 = vld [vmem:[%s3180_s2 + $0x30] sm:$0xff]  ;;  %v594_v10 = vld [vmem:[%s3182_s4] sm:$0xff]  ;;  %v595_v11 = vld [vmem:[%s3182_s4 + $0x8] sm:$0xff]  ;;  %s3129_s22 = scalar_lea.hbm %s3184_s6, %s1621_s18  ;;  %s2219_s29 = smov [#allocation3]  }
  0x1a   : > { %1879 = vmatprep.subr.bf16.mxu0 %v1878_v3  ;;  %s3248_s16 = smov (!%p268_p10, %s1607_s16), 15  ;;  %v321_v12 = vld [vmem:[%s3180_s2 + $0x38] sm:$0xff]  ;;  %v1910_v13 = vpack.c.bf16 %v595_v11, %v594_v10  ;;  %v596_v14 = vld [vmem:[%s3182_s4 + $0x10] sm:$0xff]  ;;  %v322_v19 = vld [vmem:[%s3180_s2 + $0x40] sm:$0xff]  ;;  %s2158_s10 = sshll.u32 %s2219_s29, 4  ;;  %s2159_s10 = int_to_ptr.vmem [resolvable:$false] %s2158_s10 }
  0x1b   : > { %1881 = vmatpush3.bf16.msra.mxu0 %v1878_v3  ;;  %s1619_s30 = sshll.u32 %s3248_s16, 6  ;;  %v597_v15 = vld [vmem:[%s3182_s4 + $0x18] sm:$0xff]  ;;  %v1890_v18 = vpack.c.bf16 %v321_v12, %v320_v9  ;;  %v323_v20 = vld [vmem:[%s3180_s2 + $0x48] sm:$0xff]  ;;  %v324_v22 = vld [vmem:[%s3180_s2 + $0x50] sm:$0xff]  ;;  %s264_s16 = sand.u32 1, %s2208_s24  }
  0x1c   : > { %1883 = vmatprep.subr.bf16.mxu0 %v1882_v5  ;;  %s2347_s19 = scalar_lea.vmem %s3178_s0, %s1619_s30  ;;  %v1914_v17 = vpack.c.bf16 %v597_v15, %v596_v14  ;;  %1911 = vmatprep.subr.bf16.mxu1 %v1910_v13  ;;  %v1894_v21 = vpack.c.bf16 %v323_v20, %v322_v19  ;;  %v325_v23 = vld [vmem:[%s3180_s2 + $0x58] sm:$0xff]  ;;  %v598_v24 = vld [vmem:[%s3182_s4 + $0x20] sm:$0xff]  ;;  %v599_v27 = vld [vmem:[%s3182_s4 + $0x28] sm:$0xff]  ;;  %s2489_s15 = scalar_lea.vmem %s3179_s1, %s1619_s30 }
  0x1d   : > { %v282_v16 = vld [vmem:[%s2347_s19] sm:$0xff]  ;;  %1913 = vmatpush3.bf16.msra.mxu1 %v1910_v13  ;;  %v1898_v25 = vpack.c.bf16 %v325_v23, %v324_v22  ;;  %v327_v28 = vld [vmem:[%s3180_s2 + $0x68] sm:$0xff]  ;;  %v1918_v29 = vpack.c.bf16 %v599_v27, %v598_v24  ;;  %v600_v30 = vld [vmem:[%s3182_s4 + $0x30] sm:$0xff]  ;;  %s1606_s30 = sshll.u32 %s264_s16, 2  ;;  %s3137_s27 = scalar_lea.sflag [#allocation4], %s264_s16 }
  0x1e   : > { %1750 = vmatprep.mubr.f32.mxu0 %v282_v16  ;;  %1915 = vmatprep.subr.bf16.mxu1 %v1914_v17  ;;  %v326_v26 = vld [vmem:[%s3180_s2 + $0x60] sm:$0xff]  ;;  %v601_v31 = vld [vmem:[%s3182_s4 + $0x38] sm:$0xff]  ;;  %v328_v34 = vld [vmem:[%s3180_s2 + $0x70] sm:$0xff]  ;;  %s3104_s17 = scalar_lea.vmem [#allocation3], %s1606_s30  ;;  %s2160_s11 = scalar_lea.vmem %s2159_s10, 128 }
  0x1f   : > { %1885 = vmatpush3.bf16.msra.mxu0 %v1882_v5  ;;  %v1922_v32 = vpack.c.bf16 %v601_v31, %v600_v30  ;;  %v1902_v33 = vpack.c.bf16 %v327_v28, %v326_v26  ;;  %v329_v35 = vld [vmem:[%s3180_s2 + $0x78] sm:$0xff]  ;;  %v283_v37 = vld [vmem:[%s2347_s19 + $0x8] sm:$0xff]  ;;  %v284_v38 = vld [vmem:[%s2347_s19 + $0x10] sm:$0xff]  ;;  %s1528_s20 = sshll.u32 %s3104_s17, 4  ;;  %s3131_s20 = int_to_ptr.vmem [resolvable:$true] %s1528_s20 }
  0x20   : > { %1887 = vmatprep.subr.bf16.mxu0 %v1886_v8  ;;  %v1906_v36 = vpack.c.bf16 %v329_v35, %v328_v34  ;;  %v285_v39 = vld [vmem:[%s2347_s19 + $0x18] sm:$0xff]  ;;  %v286_v40 = vld [vmem:[%s2347_s19 + $0x20] sm:$0xff]  ;;  %v287_v41 = vld [vmem:[%s2347_s19 + $0x28] sm:$0xff]  ;;  %s2154_s5 = scalar_lea.vmem %s3131_s20, 64  ;;  %p2161_p0 = scmp.lt.s32.totalorder %s3131_s20, %s2159_s10 }
  0x21   : > { %1917 = vmatpush3.bf16.msra.mxu1 %v1914_v17  ;;  %v288_v42 = vld [vmem:[%s2347_s19 + $0x30] sm:$0xff]  ;;  %v289_v43 = vld [vmem:[%s2347_s19 + $0x38] sm:$0xff]  ;;  %v290_v44 = vld [vmem:[%s2347_s19 + $0x40] sm:$0xff]  ;;  %p2155_p11 = scmp.ne.s32.totalorder %s3131_s20, %s2154_s5  ;;  %p2162_p1 = scmp.lt.s32.totalorder %s2160_s11, %s2154_s5 }
  0x22   : > { %1919 = vmatprep.subr.bf16.mxu1 %v1918_v29  ;;  %v291_v45 = vld [vmem:[%s2347_s19 + $0x48] sm:$0xff]  ;;  %v292_v46 = vld [vmem:[%s2347_s19 + $0x50] sm:$0xff]  ;;  %v293_v47 = vld [vmem:[%s2347_s19 + $0x58] sm:$0xff] }
  0x23   : > { %1889 = vmatpush3.bf16.msra.mxu0 %v1886_v8  ;;  %v294_v48 = vld [vmem:[%s2347_s19 + $0x60] sm:$0xff]  ;;  %v295_v49 = vld [vmem:[%s2347_s19 + $0x68] sm:$0xff]  ;;  %v296_v50 = vld [vmem:[%s2347_s19 + $0x70] sm:$0xff]  ;;  %p2156_p12 = pnand %p2155_p11, %p2298_p5  ;;  %p2163_p2 = por %p2162_p1, %p2161_p0 }
  0x24   : > { %1891 = vmatprep.subr.bf16.mxu0 %v1890_v18  ;;  %v297_v51 = vld [vmem:[%s2347_s19 + $0x78] sm:$0xff]  ;;  %v298_v52 = vld [vmem:[%s2347_s19 + $0x80] sm:$0xff]  ;;  %v299_v53 = vld [vmem:[%s2347_s19 + $0x88] sm:$0xff] }
  0x25   : > { %1921 = vmatpush3.bf16.msra.mxu1 %v1918_v29  ;;  %v300_v54 = vld [vmem:[%s2347_s19 + $0x90] sm:$0xff]  ;;  %v301_v55 = vld [vmem:[%s2347_s19 + $0x98] sm:$0xff]  ;;  %v302_v56 = vld [vmem:[%s2347_s19 + $0xa0] sm:$0xff]  ;;  %p2157_p13 = pneg %p2156_p12 }
  0x26   : > { %1923 = vmatprep.subr.bf16.mxu1 %v1922_v32  ;;  %v303_v57 = vld [vmem:[%s2347_s19 + $0xa8] sm:$0xff]  ;;  %v304_v58 = vld [vmem:[%s2347_s19 + $0xb0] sm:$0xff]  ;;  %v305_v59 = vld [vmem:[%s2347_s19 + $0xb8] sm:$0xff] }
  0x27   : > { %1893 = vmatpush3.bf16.msra.mxu0 %v1890_v18  ;;  %v306_v60 = vld [vmem:[%s2347_s19 + $0xc0] sm:$0xff]  ;;  %v307_v61 = vld [vmem:[%s2347_s19 + $0xc8] sm:$0xff]  ;;  %v308_v62 = vld [vmem:[%s2347_s19 + $0xd0] sm:$0xff]  ;;  %p2164_p3 = pnand %p2163_p2, %p2157_p13 }
  0x28   : > { %1895 = vmatprep.subr.bf16.mxu0 %v1894_v21  ;;  %v309_v63 = vld [vmem:[%s2347_s19 + $0xd8] sm:$0xff]  ;;  %v310_v0 = vld [vmem:[%s2347_s19 + $0xe0] sm:$0xff]  ;;  %v311_v1 = vld [vmem:[%s2347_s19 + $0xe8] sm:$0xff] }
  0x29   : > { %1925 = vmatpush3.bf16.msra.mxu1 %v1922_v32  ;;  %v312_v2 = vld [vmem:[%s2347_s19 + $0xf0] sm:$0xff]  ;;  %v313_v3 = vld [vmem:[%s2347_s19 + $0xf8] sm:$0xff]  ;;  %v602_v4 = vld [vmem:[%s3182_s4 + $0x40] sm:$0xff] }
  0x2a   : > { %v603_v5 = vld [vmem:[%s3182_s4 + $0x48] sm:$0xff]  ;;  %v604_v7 = vld [vmem:[%s3182_s4 + $0x50] sm:$0xff]  ;;  %v605_v8 = vld [vmem:[%s3182_s4 + $0x58] sm:$0xff] }
  0x2b   : > { %1897 = vmatpush3.bf16.msra.mxu0 %v1894_v21  ;;  %v1926_v6 = vpack.c.bf16 %v603_v5, %v602_v4  ;;  %v1930_v9 = vpack.c.bf16 %v605_v8, %v604_v7  ;;  %v606_v10 = vld [vmem:[%s3182_s4 + $0x60] sm:$0xff]  ;;  %v607_v11 = vld [vmem:[%s3182_s4 + $0x68] sm:$0xff]  ;;  %v608_v13 = vld [vmem:[%s3182_s4 + $0x70] sm:$0xff] }
  0x2c   : > { %1899 = vmatprep.subr.bf16.mxu0 %v1898_v25  ;;  %v1934_v12 = vpack.c.bf16 %v607_v11, %v606_v10  ;;  %v609_v14 = vld [vmem:[%s3182_s4 + $0x78] sm:$0xff]  ;;  %v2450_v16 = vld [vmem:[%s3181_s3] ss:$0 sm:$0xff] }
  0x2d   : > { %1927 = vmatprep.subr.bf16.mxu1 %v1926_v6  ;;  %v1938_v15 = vpack.c.bf16 %v609_v14, %v608_v13 }
  0x2e   : > { %1929 = vmatpush3.bf16.msra.mxu1 %v1926_v6 }
  0x2f   : > { %1901 = vmatpush3.bf16.msra.mxu0 %v1898_v25  ;;  %1931 = vmatprep.subr.bf16.mxu1 %v1930_v9 }
  0x30   : > { %1903 = vmatprep.subr.bf16.mxu0 %v1902_v33 }
  0x32   : > { %1933 = vmatpush3.bf16.msra.mxu1 %v1930_v9 }
  0x33   : > { %1905 = vmatpush3.bf16.msra.mxu0 %v1902_v33  ;;  %1935 = vmatprep.subr.bf16.mxu1 %v1934_v12 }
  0x34   : > { %1907 = vmatprep.subr.bf16.mxu0 %v1906_v36 }
  0x36   : > { %1937 = vmatpush3.bf16.msra.mxu1 %v1934_v12 }
  0x37   : > { %1909 = vmatpush3.bf16.msra.mxu0 %v1906_v36  ;;  %1939 = vmatprep.subr.bf16.mxu1 %v1938_v15 }
  0x3a   : > { %1751 = vmatmul.mubr.f32.vlgmr.msra.gmra.mrb[0].mxu0 %v283_v37  ;;  %1941 = vmatpush3.bf16.msra.mxu1 %v1938_v15 }
  0x3b   : > { %1753 = vmatprep.mubr.f32.mxu0 %v284_v38 }
  0x3e   : > { %1754 = vmatmul.mubr.f32.gmra.mrb[2].mxu0 %v285_v39 }
  0x3f   : > { %1756 = vmatprep.mubr.f32.mxu0 %v286_v40 }
  0x42   : > { %1757 = vmatmul.mubr.f32.gmra.mrb[4].mxu0 %v287_v41 }
  0x43   : > { %1759 = vmatprep.mubr.f32.mxu0 %v288_v42 }
  0x46   : > { %1760 = vmatmul.mubr.f32.gmra.mrb[6].mxu0 %v289_v43 }
  0x47   : > { %1762 = vmatprep.mubr.f32.mxu0 %v290_v44 }
  0x4a   : > { %1763 = vmatmul.mubr.f32.gmra.mrb[8].mxu0 %v291_v45 }
  0x4b   : > { %1765 = vmatprep.mubr.f32.mxu0 %v292_v46 }
  0x4e   : > { %1766 = vmatmul.mubr.f32.gmra.mrb[10].mxu0 %v293_v47 }
  0x4f   : > { %1768 = vmatprep.mubr.f32.mxu0 %v294_v48 }
  0x52   : > { %1769 = vmatmul.mubr.f32.gmra.mrb[12].mxu0 %v295_v49 }
  0x53   : > { %1771 = vmatprep.mubr.f32.mxu0 %v296_v50 }
  0x56   : > { %1772 = vmatmul.mubr.f32.gmra.mrb[14].mxu0 %v297_v51 }
  0x57   : > { %1774 = vmatprep.mubr.f32.mxu0 %v298_v52 }
  0x5a   : > { %1775 = vmatmul.mubr.f32.gmra.mrb[16].mxu0 %v299_v53 }
  0x5b   : > { %1777 = vmatprep.mubr.f32.mxu0 %v300_v54 }
  0x5e   : > { %1778 = vmatmul.mubr.f32.gmra.mrb[18].mxu0 %v301_v55 }
  0x5f   : > { %1780 = vmatprep.mubr.f32.mxu0 %v302_v56 }
  0x62   : > { %1781 = vmatmul.mubr.f32.gmra.mrb[20].mxu0 %v303_v57 }
  0x63   : > { %1783 = vmatprep.mubr.f32.mxu0 %v304_v58 }
  0x66   : > { %1784 = vmatmul.mubr.f32.gmra.mrb[22].mxu0 %v305_v59 }
  0x67   : > { %1786 = vmatprep.mubr.f32.mxu0 %v306_v60 }
  0x6a   : > { %1787 = vmatmul.mubr.f32.gmra.mrb[24].mxu0 %v307_v61 }
  0x6b   : > { %1789 = vmatprep.mubr.f32.mxu0 %v308_v62 }
  0x6e   : > { %1790 = vmatmul.mubr.f32.gmra.mrb[26].mxu0 %v309_v63 }
  0x6f   : > { %1792 = vmatprep.mubr.f32.mxu0 %v310_v0 }
  0x72   : > { %1793 = vmatmul.mubr.f32.gmra.mrb[28].mxu0 %v311_v1 }
  0x73   : > { %1795 = vmatprep.mubr.f32.mxu0 %v312_v2 }
  0x76   : > { %1796 = vmatmul.mubr.f32.gmra.mrb[30].mxu0 %v313_v3 }
 0x10d   : > { %v1752_v17 = vpop.f32.mrb[0].mxu0 }
 0x10e   : > { %v409_v18 = vadd.f32 %v1752_v17, %v2450_v16  ;;  %v403_v19 = vpop.f32.mrb[1].mxu0 }
 0x10f   : > { %v404_v20 = vadd.f32 %v2450_v16, %v403_v19 }
 0x111   : > { %1986 = vtanh.f32 %v404_v20  ;;  %v1755_v21 = vpop.f32.mrb[2].mxu0 }
 0x112   : > { %1988 = vtanh.f32 %v409_v18  ;;  %v419_v22 = vadd.f32 %v1755_v21, %v2450_v16  ;;  %v413_v23 = vpop.f32.mrb[3].mxu0 }
 0x113   : > { %v414_v24 = vadd.f32 %v2450_v16, %v413_v23 }
 0x115   : > { %1990 = vtanh.f32 %v414_v24  ;;  %v1758_v25 = vpop.f32.mrb[4].mxu0 }
 0x116   : > { %1992 = vtanh.f32 %v419_v22  ;;  %v429_v26 = vadd.f32 %v1758_v25, %v2450_v16  ;;  %v423_v27 = vpop.f32.mrb[5].mxu0 }
 0x117   : > { %v424_v28 = vadd.f32 %v2450_v16, %v423_v27 }
 0x119   : > { %1994 = vtanh.f32 %v424_v28  ;;  %v1761_v29 = vpop.f32.mrb[6].mxu0 }
 0x11a   : > { %1996 = vtanh.f32 %v429_v26  ;;  %v439_v30 = vadd.f32 %v1761_v29, %v2450_v16  ;;  %v433_v31 = vpop.f32.mrb[7].mxu0 }
 0x11b   : > { %v1987_v32 = vpop.eup %1986  ;;  %v434_v33 = vadd.f32 %v2450_v16, %v433_v31 }
 0x11c   : > { %v1989_v34 = vpop.eup %1988  ;;  %1830 = vmatprep.mubr.f32.mxu1 %v1987_v32 }
 0x11d   : > { %1998 = vtanh.f32 %v434_v33  ;;  %v1764_v35 = vpop.f32.mrb[8].mxu0  ;;  %1831 = vmatmul.mubr.f32.vlgmr.msra.gmra.mrb[0].mxu1 %v1989_v34 }
 0x11e   : > { %2000 = vtanh.f32 %v439_v30  ;;  %v449_v36 = vadd.f32 %v1764_v35, %v2450_v16  ;;  %v443_v37 = vpop.f32.mrb[9].mxu0 }
 0x11f   : > { %v1991_v38 = vpop.eup %1990  ;;  %v444_v39 = vadd.f32 %v2450_v16, %v443_v37 }
 0x120   : > { %v1993_v40 = vpop.eup %1992  ;;  %1833 = vmatprep.mubr.f32.mxu1 %v1991_v38 }
 0x121   : > { %2002 = vtanh.f32 %v444_v39  ;;  %v1767_v41 = vpop.f32.mrb[10].mxu0  ;;  %1834 = vmatmul.mubr.f32.gmra.mrb[2].mxu1 %v1993_v40 }
 0x122   : > { %2004 = vtanh.f32 %v449_v36  ;;  %v459_v42 = vadd.f32 %v1767_v41, %v2450_v16  ;;  %v453_v43 = vpop.f32.mrb[11].mxu0 }
 0x123   : > { %v1995_v44 = vpop.eup %1994  ;;  %v454_v45 = vadd.f32 %v2450_v16, %v453_v43 }
 0x124   : > { %v1997_v46 = vpop.eup %1996  ;;  %1836 = vmatprep.mubr.f32.mxu1 %v1995_v44 }
 0x125   : > { %2006 = vtanh.f32 %v454_v45  ;;  %v1770_v47 = vpop.f32.mrb[12].mxu0  ;;  %1837 = vmatmul.mubr.f32.gmra.mrb[4].mxu1 %v1997_v46 }
 0x126   : > { %2008 = vtanh.f32 %v459_v42  ;;  %v469_v48 = vadd.f32 %v1770_v47, %v2450_v16  ;;  %v463_v49 = vpop.f32.mrb[13].mxu0 }
 0x127   : > { %v1999_v50 = vpop.eup %1998  ;;  %v464_v51 = vadd.f32 %v2450_v16, %v463_v49 }
 0x128   : > { %v2001_v52 = vpop.eup %2000  ;;  %1839 = vmatprep.mubr.f32.mxu1 %v1999_v50  ;;  %v2218_v50 = vmov 0  }
 0x129   : > { %2010 = vtanh.f32 %v464_v51  ;;  %v1773_v53 = vpop.f32.mrb[14].mxu0  ;;  %1840 = vmatmul.mubr.f32.gmra.mrb[6].mxu1 %v2001_v52  ;;  %1985 = vset.pattern.permute.xlu1 %v2218_v50  ;;  %v2494_v51 = vstv %s610_s12  ;;  %v2497_v52 = vld [vmem:[%s2489_s15] sm:$0xff] }
 0x12a   : > { %2012 = vtanh.f32 %v469_v48  ;;  %v479_v54 = vadd.f32 %v1773_v53, %v2450_v16  ;;  %v473_v55 = vpop.f32.mrb[15].mxu0  ;;  %1984 = vset.pattern.permute.xlu0 %v2218_v50  ;;  %vm869_vm2 = vcmp.eq.f32.partialorder %v2497_v52, 0.0 }
 0x12b   : > { %v2003_v56 = vpop.eup %2002  ;;  %v474_v57 = vadd.f32 %v2450_v16, %v473_v55 }
 0x12c   : > { %v2005_v58 = vpop.eup %2004  ;;  %1842 = vmatprep.mubr.f32.mxu1 %v2003_v56 }
 0x12d   : > { %2014 = vtanh.f32 %v474_v57  ;;  %v1776_v59 = vpop.f32.mrb[16].mxu0  ;;  %1843 = vmatmul.mubr.f32.gmra.mrb[8].mxu1 %v2005_v58  ;;  %v2504_v57 = vld [vmem:[%s2489_s15 + $0x18] sm:$0xff]  ;;  %v2507_v58 = vld [vmem:[%s2489_s15 + $0x10] sm:$0xff] }
 0x12e   : > { %2016 = vtanh.f32 %v479_v54  ;;  %v489_v60 = vadd.f32 %v1776_v59, %v2450_v16  ;;  %v483_v61 = vpop.f32.mrb[17].mxu0  ;;  %vm872_vm3 = vcmp.eq.f32.partialorder %v2504_v57, 0.0  ;;  %vm871_vm4 = vcmp.eq.f32.partialorder %v2507_v58, 0.0 }
 0x12f   : > { %v2007_v62 = vpop.eup %2006  ;;  %v484_v63 = vadd.f32 %v2450_v16, %v483_v61 }
 0x130   : > { %v2009_v0 = vpop.eup %2008  ;;  %1845 = vmatprep.mubr.f32.mxu1 %v2007_v62 }
 0x131   : > { %2018 = vtanh.f32 %v484_v63  ;;  %v1779_v1 = vpop.f32.mrb[18].mxu0  ;;  %1846 = vmatmul.mubr.f32.gmra.mrb[10].mxu1 %v2009_v0 }
 0x132   : > { %2020 = vtanh.f32 %v489_v60  ;;  %v499_v2 = vadd.f32 %v1779_v1, %v2450_v16  ;;  %v493_v3 = vpop.f32.mrb[19].mxu0 }
 0x133   : > { %v2011_v4 = vpop.eup %2010  ;;  %v494_v5 = vadd.f32 %v2450_v16, %v493_v3 }
 0x134   : > { %v2013_v6 = vpop.eup %2012  ;;  %1848 = vmatprep.mubr.f32.mxu1 %v2011_v4  ;;  %v2522_v4 = vld [vmem:[%s2489_s15 + $0x28] sm:$0xff] }
 0x135   : > { %2022 = vtanh.f32 %v494_v5  ;;  %v1782_v7 = vpop.f32.mrb[20].mxu0  ;;  %1849 = vmatmul.mubr.f32.gmra.mrb[12].mxu1 %v2013_v6  ;;  %v2525_v5 = vld [vmem:[%s2489_s15 + $0x20] sm:$0xff]  ;;  %vm874_vm5 = vcmp.eq.f32.partialorder %v2522_v4, 0.0 }
 0x136   : > { %2024 = vtanh.f32 %v499_v2  ;;  %v509_v8 = vadd.f32 %v1782_v7, %v2450_v16  ;;  %v503_v9 = vpop.f32.mrb[21].mxu0  ;;  %vm873_vm6 = vcmp.eq.f32.partialorder %v2525_v5, 0.0 }
 0x137   : > { %v2015_v10 = vpop.eup %2014  ;;  %v504_v11 = vadd.f32 %v2450_v16, %v503_v9 }
 0x138   : > { %v2017_v12 = vpop.eup %2016  ;;  %1851 = vmatprep.mubr.f32.mxu1 %v2015_v10 }
 0x139   : > { %2026 = vtanh.f32 %v504_v11  ;;  %v1785_v13 = vpop.f32.mrb[22].mxu0  ;;  %1852 = vmatmul.mubr.f32.gmra.mrb[14].mxu1 %v2017_v12 }
 0x13a   : > { %2028 = vtanh.f32 %v509_v8  ;;  %v519_v14 = vadd.f32 %v1785_v13, %v2450_v16  ;;  %v513_v15 = vpop.f32.mrb[23].mxu0 }
 0x13b   : > { %v2019_v17 = vpop.eup %2018  ;;  %v514_v18 = vadd.f32 %v2450_v16, %v513_v15  ;;  %v2541_v15 = vld [vmem:[%s2489_s15 + $0x30] sm:$0xff] }
 0x13c   : > { %v2021_v19 = vpop.eup %2020  ;;  %1854 = vmatprep.mubr.f32.mxu1 %v2019_v17  ;;  %vm875_vm8 = vcmp.eq.f32.partialorder %v2541_v15, 0.0 }
 0x13d   : > { %2030 = vtanh.f32 %v514_v18  ;;  %v1788_v20 = vpop.f32.mrb[24].mxu0  ;;  %1855 = vmatmul.mubr.f32.gmra.mrb[16].mxu1 %v2021_v19 }
 0x13e   : > { %2032 = vtanh.f32 %v519_v14  ;;  %v529_v21 = vadd.f32 %v1788_v20, %v2450_v16  ;;  %v523_v22 = vpop.f32.mrb[25].mxu0  ;;  %v2538_v14 = vld [vmem:[%s2489_s15 + $0x38] sm:$0xff] }
 0x13f   : > { %v2023_v23 = vpop.eup %2022  ;;  %v524_v24 = vadd.f32 %v2450_v16, %v523_v22  ;;  %vm876_vm7 = vcmp.eq.f32.partialorder %v2538_v14, 0.0 }
 0x140   : > { %v2025_v25 = vpop.eup %2024  ;;  %1857 = vmatprep.mubr.f32.mxu1 %v2023_v23 }
 0x141   : > { %2034 = vtanh.f32 %v524_v24  ;;  %v1791_v26 = vpop.f32.mrb[26].mxu0  ;;  %1858 = vmatmul.mubr.f32.gmra.mrb[18].mxu1 %v2025_v25  ;;  %v2555_v25 = vld [vmem:[%s2489_s15 + $0x48] sm:$0xff] }
 0x142   : > { %2036 = vtanh.f32 %v529_v21  ;;  %v539_v27 = vadd.f32 %v1791_v26, %v2450_v16  ;;  %v533_v28 = vpop.f32.mrb[27].mxu0  ;;  %vm878_vm9 = vcmp.eq.f32.partialorder %v2555_v25, 0.0 }
 0x143   : > { %v2027_v29 = vpop.eup %2026  ;;  %v534_v30 = vadd.f32 %v2450_v16, %v533_v28  ;;  %v2559_v28 = vld [vmem:[%s2489_s15 + $0x40] sm:$0xff] }
 0x144   : > { %v2029_v31 = vpop.eup %2028  ;;  %1860 = vmatprep.mubr.f32.mxu1 %v2027_v29  ;;  %vm877_vm10 = vcmp.eq.f32.partialorder %v2559_v28, 0.0 }
 0x145   : > { %2038 = vtanh.f32 %v534_v30  ;;  %v1794_v32 = vpop.f32.mrb[28].mxu0  ;;  %1861 = vmatmul.mubr.f32.gmra.mrb[20].mxu1 %v2029_v31 }
 0x146   : > { %2040 = vtanh.f32 %v539_v27  ;;  %v549_v33 = vadd.f32 %v1794_v32, %v2450_v16  ;;  %v543_v34 = vpop.f32.mrb[29].mxu0 }
 0x147   : > { %v2031_v35 = vpop.eup %2030  ;;  %v544_v36 = vadd.f32 %v2450_v16, %v543_v34 }
 0x148   : > { %v2033_v37 = vpop.eup %2032  ;;  %1863 = vmatprep.mubr.f32.mxu1 %v2031_v35 }
 0x149   : > { %2042 = vtanh.f32 %v544_v36  ;;  %v1797_v38 = vpop.f32.mrb[30].mxu0  ;;  %1864 = vmatmul.mubr.f32.gmra.mrb[22].mxu1 %v2033_v37 }
 0x14a   : > { %2044 = vtanh.f32 %v549_v33  ;;  %v559_v39 = vadd.f32 %v1797_v38, %v2450_v16  ;;  %v553_v40 = vpop.f32.mrb[31].mxu0 }
 0x14b   : > { %v2035_v41 = vpop.eup %2034  ;;  %v554_v42 = vadd.f32 %v2450_v16, %v553_v40  ;;  %v2492_v16 = vld [vmem:[%s2489_s15 + $0x8] sm:$0xff]  ;;  %v2577_v40 = vld [vmem:[%s2489_s15 + $0x50] sm:$0xff] }
 0x14c   : > { %v2037_v43 = vpop.eup %2036  ;;  %1866 = vmatprep.mubr.f32.mxu1 %v2035_v41  ;;  %vm870_vm0 = vcmp.eq.f32.partialorder %v2492_v16, 0.0  ;;  %vm879_vm12 = vcmp.eq.f32.partialorder %v2577_v40, 0.0 }
 0x14d   : > { %2046 = vtanh.f32 %v554_v42  ;;  %1867 = vmatmul.mubr.f32.gmra.mrb[24].mxu1 %v2037_v43 }
 0x14e   : > { %2048 = vtanh.f32 %v559_v39  ;;  %v2574_v39 = vld [vmem:[%s2489_s15 + $0x58] sm:$0xff] }
 0x14f   : > { %v2039_v44 = vpop.eup %2038  ;;  %vm880_vm11 = vcmp.eq.f32.partialorder %v2574_v39, 0.0 }
 0x150   : > { %v2041_v45 = vpop.eup %2040  ;;  %1869 = vmatprep.mubr.f32.mxu1 %v2039_v44 }
 0x151   : > { %1870 = vmatmul.mubr.f32.gmra.mrb[26].mxu1 %v2041_v45 }
 0x153   : > { %v2043_v46 = vpop.eup %2042 }
 0x154   : > { %v2045_v47 = vpop.eup %2044  ;;  %1872 = vmatprep.mubr.f32.mxu1 %v2043_v46 }
 0x155   : > { %1873 = vmatmul.mubr.f32.gmra.mrb[28].mxu1 %v2045_v47 }
 0x157   : > { %v2047_v48 = vpop.eup %2046 }
 0x158   : > { %v2049_v49 = vpop.eup %2048  ;;  %1875 = vmatprep.mubr.f32.mxu1 %v2047_v48 }
 0x159   : > { %1876 = vmatmul.mubr.f32.gmra.mrb[30].mxu1 %v2049_v49 }
 0x1f0   : > { %v1832_v53 = vpop.f32.mrb[0].mxu1 }
 0x1f1   : > { %v684_v54 = vadd.f32 %v1832_v53, %v2494_v51  ;;  %v678_v55 = vpop.f32.mrb[1].mxu1 }
 0x1f2   : > { %v679_v56 = vadd.f32 %v678_v55, %v2494_v51  ;;  %v2594_v55 = vld [vmem:[%s2489_s15 + $0x68] sm:$0xff] }
 0x1f3   : > { %v2509_v59 = vsel %vm870_vm0, -10000.0, %v684_v54  ;;  %vm882_vm13 = vcmp.eq.f32.partialorder %v2594_v55, 0.0 }
 0x1f4   : > { %v935_v60 = vsel %vm933_vm1, %v2509_v59, -inf  ;;  %v2513_v61 = vsel %vm869_vm2, -10000.0, %v679_v56  ;;  %v1835_v62 = vpop.f32.mrb[2].mxu1  ;;  %v2597_v56 = vld [vmem:[%s2489_s15 + $0x60] sm:$0xff] }
 0x1f5   : > { %v934_v63 = vsel %vm933_vm1, %v2513_v61, -inf  ;;  %v694_v0 = vadd.f32 %v1835_v62, %v2494_v51  ;;  %v688_v1 = vpop.f32.mrb[3].mxu1  ;;  %vm881_vm14 = vcmp.eq.f32.partialorder %v2597_v56, 0.0 }
 0x1f6   : > { %v936_v2 = vmax.f32 %v934_v63, %v935_v60  ;;  %v689_v3 = vadd.f32 %v688_v1, %v2494_v51  ;;  %v2604_v1 = vld [vmem:[%s2489_s15 + $0x78] sm:$0xff] }
 0x1f7   : > { %v2527_v6 = vsel %vm872_vm3, -10000.0, %v694_v0  ;;  %3205 = vst [vmem:[#allocation6_spill] sm:$0xff] %v2604_v1  ;;  %vm884_vm15 = vcmp.eq.f32.partialorder %v2604_v1, 0.0 }
 0x1f8   : > { %v2529_v7 = vsel %vm871_vm4, -10000.0, %v689_v3  ;;  %v1838_v8 = vpop.f32.mrb[4].mxu1  ;;  %v939_v17 = vsel %vm933_vm1, %v2527_v6, -inf }
 0x1f9   : > { %v937_v9 = vsel %vm933_vm1, %v2529_v7, -inf  ;;  %v704_v10 = vadd.f32 %v1838_v8, %v2494_v51  ;;  %v698_v11 = vpop.f32.mrb[5].mxu1 }
 0x1fa   : > { %v938_v12 = vmax.f32 %v936_v2, %v937_v9  ;;  %v699_v13 = vadd.f32 %v698_v11, %v2494_v51 }
 0x1fb   : > { %v2545_v18 = vsel %vm874_vm5, -10000.0, %v704_v10 }
 0x1fc   : > { %v2547_v19 = vsel %vm873_vm6, -10000.0, %v699_v13  ;;  %v940_v20 = vmax.f32 %v938_v12, %v939_v17  ;;  %v1841_v21 = vpop.f32.mrb[6].mxu1  ;;  %v943_v29 = vsel %vm933_vm1, %v2545_v18, -inf  ;;  %v2613_v12 = vld [vmem:[%s2489_s15 + $0x70] sm:$0xff] }
 0x1fd   : > { %v941_v22 = vsel %vm933_vm1, %v2547_v19, -inf  ;;  %v714_v23 = vadd.f32 %v1841_v21, %v2494_v51  ;;  %v708_v24 = vpop.f32.mrb[7].mxu1  ;;  %3206 = vst [vmem:[#allocation7_spill] sm:$0xff] %v2613_v12  ;;  %vm883_vm0 = vcmp.eq.f32.partialorder %v2613_v12, 0.0 }
 0x1fe   : > { %v942_v26 = vmax.f32 %v940_v20, %v941_v22  ;;  %v709_v27 = vadd.f32 %v708_v24, %v2494_v51 }
 0x1ff   : > { %v2563_v30 = vsel %vm876_vm7, -10000.0, %v714_v23 }
 0x200   : > { %v2565_v31 = vsel %vm875_vm8, -10000.0, %v709_v27  ;;  %v944_v32 = vmax.f32 %v942_v26, %v943_v29  ;;  %v1844_v33 = vpop.f32.mrb[8].mxu1  ;;  %v947_v41 = vsel %vm933_vm1, %v2563_v30, -inf  ;;  %v2627_v29 = vld [vmem:[%s2489_s15 + $0x88] sm:$0xff] }
 0x201   : > { %v945_v34 = vsel %vm933_vm1, %v2565_v31, -inf  ;;  %v724_v35 = vadd.f32 %v1844_v33, %v2494_v51  ;;  %v718_v36 = vpop.f32.mrb[9].mxu1  ;;  %3207 = vst [vmem:[#allocation8_spill] sm:$0xff] %v2627_v29  ;;  %vm886_vm2 = vcmp.eq.f32.partialorder %v2627_v29, 0.0 }
 0x202   : > { %v946_v37 = vmax.f32 %v944_v32, %v945_v34  ;;  %v719_v38 = vadd.f32 %v718_v36, %v2494_v51 }
 0x203   : > { %v2581_v42 = vsel %vm878_vm9, -10000.0, %v724_v35  ;;  %v2631_v35 = vld [vmem:[%s2489_s15 + $0x80] sm:$0xff] }
 0x204   : > { %v948_v43 = vmax.f32 %v946_v37, %v947_v41  ;;  %v956_v44 = vsel %vm933_vm1, %v2581_v42, -inf  ;;  %v2585_v45 = vsel %vm877_vm10, -10000.0, %v719_v38  ;;  %v1847_v46 = vpop.f32.mrb[10].mxu1  ;;  %3208 = vst [vmem:[#allocation9_spill] sm:$0xff] %v2631_v35  ;;  %vm885_vm3 = vcmp.eq.f32.partialorder %v2631_v35, 0.0 }
 0x205   : > { %v955_v47 = vsel %vm933_vm1, %v2585_v45, -inf  ;;  %v734_v48 = vadd.f32 %v1847_v46, %v2494_v51  ;;  %v728_v49 = vpop.f32.mrb[11].mxu1 }
 0x206   : > { %v949_v50 = vrot.slane %v948_v43, 4  ;;  %v957_v53 = vmax.f32 %v955_v47, %v956_v44  ;;  %v729_v54 = vadd.f32 %v728_v49, %v2494_v51 }
 0x207   : > { %v2599_v62 = vsel %vm880_vm11, -10000.0, %v734_v48 }
 0x208   : > { %v950_v60 = vmax.f32 %v948_v43, %v949_v50  ;;  %v2601_v63 = vsel %vm879_vm12, -10000.0, %v729_v54  ;;  %v1850_v0 = vpop.f32.mrb[12].mxu1  ;;  %v960_v13 = vsel %vm933_vm1, %v2599_v62, -inf  ;;  %v2651_v50 = vld [vmem:[%s2489_s15 + $0x98] sm:$0xff] }
 0x209   : > { %v958_v2 = vsel %vm933_vm1, %v2601_v63, -inf  ;;  %v744_v3 = vadd.f32 %v1850_v0, %v2494_v51  ;;  %v738_v8 = vpop.f32.mrb[13].mxu1  ;;  %3209 = vst [vmem:[#allocation10_spill] sm:$0xff] %v2651_v50  ;;  %vm888_vm4 = vcmp.eq.f32.partialorder %v2651_v50, 0.0  ;;  %v2747_v0 = vld [vmem:[%s2489_s15 + $0xe0] sm:$0xff] }
 0x20a   : > { %v951_v9 = vrot.slane %v950_v60, 2  ;;  %v959_v10 = vmax.f32 %v957_v53, %v958_v2  ;;  %v739_v11 = vadd.f32 %v738_v8, %v2494_v51  ;;  %v2654_v53 = vld [vmem:[%s2489_s15 + $0x90] sm:$0xff]  ;;  %3219 = vst [vmem:[#allocation20_spill] sm:$0xff] %v2747_v0 }
 0x20b   : > { %v2618_v20 = vsel %vm882_vm13, -10000.0, %v744_v3  ;;  %3210 = vst [vmem:[#allocation11_spill] sm:$0xff] %v2654_v53  ;;  %vm887_vm5 = vcmp.eq.f32.partialorder %v2654_v53, 0.0 }
 0x20c   : > { %v952_v17 = vmax.f32 %v950_v60, %v951_v9  ;;  %v2620_v21 = vsel %vm881_vm14, -10000.0, %v739_v11  ;;  %v961_v22 = vmax.f32 %v959_v10, %v960_v13  ;;  %v1853_v23 = vpop.f32.mrb[14].mxu1  ;;  %v964_v36 = vsel %vm933_vm1, %v2618_v20, -inf  ;;  %v2666_v9 = vld [vmem:[%s2489_s15 + $0xa8] sm:$0xff] }
 0x20d   : > { %v962_v24 = vsel %vm933_vm1, %v2620_v21, -inf  ;;  %v754_v26 = vadd.f32 %v1853_v23, %v2494_v51  ;;  %v748_v27 = vpop.f32.mrb[15].mxu1  ;;  %3211 = vst [vmem:[#allocation12_spill] sm:$0xff] %v2666_v9  ;;  %vm890_vm6 = vcmp.eq.f32.partialorder %v2666_v9, 0.0  ;;  %vm897_vm14 = vcmp.eq.f32.partialorder %v2747_v0, 0.0 }
 0x20e   : > { %v953_v32 = vrot.slane %v952_v17, 1  ;;  %v963_v33 = vmax.f32 %v961_v22, %v962_v24  ;;  %v749_v34 = vadd.f32 %v748_v27, %v2494_v51  ;;  %v2677_v22 = vld [vmem:[%s2489_s15 + $0xa0] sm:$0xff] }
 0x20f   : > { %v2637_v37 = vsel %vm884_vm15, -10000.0, %v754_v26  ;;  %3212 = vst [vmem:[#allocation13_spill] sm:$0xff] %v2677_v22  ;;  %v2685_v26 = vld [vmem:[%s2489_s15 + $0xb8] sm:$0xff]  ;;  %vm889_vm7 = vcmp.eq.f32.partialorder %v2677_v22, 0.0 }
 0x210   : > { %v2639_v38 = vmax.f32 %v952_v17, %v953_v32  ;;  %v2641_v41 = vsel %vm883_vm0, -10000.0, %v749_v34  ;;  %v965_v43 = vmax.f32 %v963_v33, %v964_v36  ;;  %v1856_v44 = vpop.f32.mrb[16].mxu1  ;;  %v968_v46 = vsel %vm933_vm1, %v2637_v37, -inf  ;;  %3213 = vst [vmem:[#allocation14_spill] sm:$0xff] %v2685_v26 }
 0x211   : > { %v966_v47 = vsel %vm933_vm1, %v2641_v41, -inf  ;;  %v764_v48 = vadd.f32 %v1856_v44, %v2494_v51  ;;  %v758_v49 = vpop.f32.mrb[17].mxu1  ;;  %vm892_vm8 = vcmp.eq.f32.partialorder %v2685_v26, 0.0 }
 0x212   : > { %v1024_v60 = vsub.f32 %v2565_v31, %v2639_v38  ;;  %v967_v2 = vmax.f32 %v965_v43, %v966_v47  ;;  %v759_v8 = vadd.f32 %v758_v49, %v2494_v51  ;;  %v1018_v10 = vsub.f32 %v2513_v61, %v2639_v38 }
 0x213   : > { %v2662_v3 = vsel %vm886_vm2, -10000.0, %v764_v48  ;;  %v1019_v11 = vsub.f32 %v2509_v59, %v2639_v38  ;;  %v1020_v59 = vsub.f32 %v2529_v7, %v2639_v38  ;;  %v1021_v27 = vsub.f32 %v2527_v6, %v2639_v38  ;;  %v2708_v48 = vld [vmem:[%s2489_s15 + $0xb0] sm:$0xff] }
 0x214   : > { %v969_v13 = vmax.f32 %v967_v2, %v968_v46  ;;  %v977_v31 = vsel %vm933_vm1, %v2662_v3, -inf  ;;  %v1859_v17 = vpop.f32.mrb[18].mxu1  ;;  %v2681_v23 = vsel %vm885_vm3, -10000.0, %v759_v8  ;;  %v1062_v36 = vmul.f32 1.442695, %v1024_v60  ;;  %3214 = vst [vmem:[#allocation15_spill] sm:$0xff] %v2708_v48 }
 0x215   : > { %v774_v61 = vadd.f32 %v1859_v17, %v2494_v51  ;;  %v768_v24 = vpop.f32.mrb[19].mxu1  ;;  %v976_v33 = vsel %vm933_vm1, %v2681_v23, -inf  ;;  %v1022_v7 = vsub.f32 %v2547_v19, %v2639_v38  ;;  %v2714_v2 = vld [vmem:[%s2489_s15 + $0xc8] sm:$0xff]  ;;  %v2717_v8 = vld [vmem:[%s2489_s15 + $0xc0] sm:$0xff]  ;;  %vm891_vm9 = vcmp.eq.f32.partialorder %v2708_v48, 0.0 }
 0x216   : > { %v970_v32 = vrot.slane %v969_v13, 4  ;;  %v769_v34 = vadd.f32 %v768_v24, %v2494_v51  ;;  %v978_v43 = vmax.f32 %v976_v33, %v977_v31  ;;  %3215 = vst [vmem:[#allocation16_spill] sm:$0xff] %v2714_v2  ;;  %3216 = vst [vmem:[#allocation17_spill] sm:$0xff] %v2717_v8  ;;  %v1052_v24 = vmul.f32 1.442695, %v1019_v11  ;;  %v2734_v11 = vld [vmem:[%s2489_s15 + $0xd8] sm:$0xff] }
 0x217   : > { %v2700_v6 = vsel %vm888_vm4, -10000.0, %v774_v61  ;;  %2050 = vpow2.f32 %v1062_v36  ;;  %v1054_v33 = vmul.f32 1.442695, %v1020_v59  ;;  %vm894_vm10 = vcmp.eq.f32.partialorder %v2714_v2, 0.0  ;;  %3217 = vst [vmem:[#allocation18_spill] sm:$0xff] %v2734_v11 }
 0x218   : > { %v971_v44 = vmax.f32 %v969_v13, %v970_v32  ;;  %v2704_v46 = vsel %vm887_vm5, -10000.0, %v769_v34  ;;  %v1862_v47 = vpop.f32.mrb[20].mxu1  ;;  %v1050_v13 = vmul.f32 1.442695, %v1018_v10  ;;  %v981_v32 = vsel %vm933_vm1, %v2700_v6, -inf }
 0x219   : > { %v979_v49 = vsel %vm933_vm1, %v2704_v46, -inf  ;;  %v784_v60 = vadd.f32 %v1862_v47, %v2494_v51  ;;  %v778_v19 = vpop.f32.mrb[21].mxu1  ;;  %vm893_vm11 = vcmp.eq.f32.partialorder %v2717_v8, 0.0  ;;  %vm896_vm12 = vcmp.eq.f32.partialorder %v2734_v11, 0.0 }
 0x21a   : > { %v972_v31 = vrot.slane %v971_v44, 2  ;;  %v980_v17 = vmax.f32 %v978_v43, %v979_v49  ;;  %v779_v61 = vadd.f32 %v778_v19, %v2494_v51  ;;  %2052 = vpow2.f32 %v1050_v13 }
 0x21b   : > { %v2725_v47 = vsel %vm890_vm6, -10000.0, %v784_v60  ;;  %v2740_v60 = vld [vmem:[%s2489_s15 + $0xd0] sm:$0xff]  ;;  %v1056_v19 = vmul.f32 1.442695, %v1021_v27  ;;  %2054 = vpow2.f32 %v1052_v24  ;;  %v2757_v24 = vld [vmem:[%s2489_s15 + $0xe8] sm:$0xff] }
 0x21c   : > { %v973_v34 = vmax.f32 %v971_v44, %v972_v31  ;;  %v2729_v10 = vsel %vm889_vm7, -10000.0, %v779_v61  ;;  %v982_v43 = vmax.f32 %v980_v17, %v981_v32  ;;  %v1865_v49 = vpop.f32.mrb[22].mxu1  ;;  %3218 = vst [vmem:[#allocation19_spill] sm:$0xff] %v2740_v60  ;;  %v985_v32 = vsel %vm933_vm1, %v2725_v47, -inf  ;;  %3220 = vst [vmem:[#allocation21_spill] sm:$0xff] %v2757_v24 }
 0x21d   : > { %v983_v59 = vsel %vm933_vm1, %v2729_v10, -inf  ;;  %v794_v36 = vadd.f32 %v1865_v49, %v2494_v51  ;;  %v788_v44 = vpop.f32.mrb[23].mxu1  ;;  %2056 = vpow2.f32 %v1054_v33  ;;  %v1058_v49 = vmul.f32 1.442695, %v1022_v7 }
 0x21e   : > { %v974_v31 = vrot.slane %v973_v34, 1  ;;  %v984_v17 = vmax.f32 %v982_v43, %v983_v59  ;;  %v789_v61 = vadd.f32 %v788_v44, %v2494_v51  ;;  %vm895_vm13 = vcmp.eq.f32.partialorder %v2740_v60, 0.0 }
 0x21f   : > { %v3221_v59 = vsub.f32 %v2545_v18, %v2639_v38  ;;  %v2764_v7 = vsel %vm892_vm8, -10000.0, %v794_v36  ;;  %2058 = vpow2.f32 %v1056_v19  ;;  %vm898_vm15 = vcmp.eq.f32.partialorder %v2757_v24, 0.0 }
 0x220   : > { %v2749_v54 = vmax.f32 %v973_v34, %v974_v31  ;;  %v2753_v13 = vsel %vm891_vm9, -10000.0, %v789_v61  ;;  %v986_v27 = vmax.f32 %v984_v17, %v985_v32  ;;  %v1868_v43 = vpop.f32.mrb[24].mxu1  ;;  %2060 = vpow2.f32 %v1058_v49 }
 0x221   : > { %v1060_v44 = vmul.f32 1.442695, %v3221_v59  ;;  %v987_v33 = vsel %vm933_vm1, %v2753_v13, -inf  ;;  %v804_v34 = vadd.f32 %v1868_v43, %v2494_v51  ;;  %v798_v31 = vpop.f32.mrb[25].mxu1  ;;  %v2790_v48 = vpop.eup %2050 }
 0x222   : > { %v1026_v17 = vsub.f32 %v2585_v45, %v2749_v54  ;;  %v1027_v61 = vsub.f32 %v2581_v42, %v2749_v54  ;;  %v1028_v18 = vsub.f32 %v2601_v63, %v2749_v54  ;;  %v1029_v36 = vsub.f32 %v2599_v62, %v2749_v54  ;;  %v2788_v63 = vld [vmem:[%s2489_s15 + $0xf0] sm:$0xff] }
 0x223   : > { %v1030_v32 = vsub.f32 %v2620_v21, %v2749_v54  ;;  %v1031_v19 = vsub.f32 %v2618_v20, %v2749_v54  ;;  %v1032_v45 = vsub.f32 %v2641_v41, %v2749_v54  ;;  %v1033_v42 = vsub.f32 %v2637_v37, %v2749_v54  ;;  %3222 = vst [vmem:[#allocation22_spill] sm:$0xff] %v2788_v63 }
 0x224   : > { %v1066_v43 = vmul.f32 1.442695, %v1026_v17  ;;  %v1068_v62 = vmul.f32 1.442695, %v1027_v61  ;;  %v1070_v59 = vmul.f32 1.442695, %v1028_v18  ;;  %v988_v26 = vmax.f32 %v986_v27, %v987_v33  ;;  %v2795_v50 = vpop.eup %2052 }
 0x225   : > { %v1072_v21 = vmul.f32 1.442695, %v1029_v36  ;;  %v989_v20 = vsel %vm933_vm1, %v2764_v7, -inf  ;;  %v799_v9 = vadd.f32 %v798_v31, %v2494_v51  ;;  %v1074_v41 = vmul.f32 1.442695, %v1030_v32  ;;  %v1871_v22 = vpop.f32.mrb[26].mxu1  ;;  %v2807_v49 = vpop.eup %2054 }
 0x226   : > { %2062 = vpow2.f32 %v1066_v43  ;;  %v1076_v37 = vmul.f32 1.442695, %v1031_v19  ;;  %v990_v54 = vmax.f32 %v988_v26, %v989_v20  ;;  %v2799_v27 = vsel %vm894_vm10, -10000.0, %v804_v34  ;;  %v808_v31 = vpop.f32.mrb[27].mxu1 }
 0x227   : > { %2064 = vpow2.f32 %v1068_v62  ;;  %v2803_v33 = vsel %vm893_vm11, -10000.0, %v799_v9  ;;  %v814_v17 = vadd.f32 %v1871_v22, %v2494_v51  ;;  %vm899_vm0 = vcmp.eq.f32.partialorder %v2788_v63, 0.0  ;;  %v2813_v36 = vpop.eup %2056 }
 0x228   : > { %2066 = vpow2.f32 %v1070_v59  ;;  %v991_v26 = vrot.slane %v990_v54, 4  ;;  %v998_v61 = vsel %vm933_vm1, %v2799_v27, -inf  ;;  %v997_v34 = vsel %vm933_vm1, %v2803_v33, -inf  ;;  %v1874_v18 = vpop.f32.mrb[28].mxu1 }
 0x229   : > { %2068 = vpow2.f32 %v1072_v21  ;;  %v999_v9 = vmax.f32 %v997_v34, %v998_v61  ;;  %v2817_v22 = vsel %vm896_vm12, -10000.0, %v814_v17  ;;  %v809_v32 = vadd.f32 %v808_v31, %v2494_v51  ;;  %v818_v19 = vpop.f32.mrb[29].mxu1  ;;  %v2824_v2 = vpop.eup %2058 }
 0x22a   : > { %v3223_v43 = vsub.f32 %v2563_v30, %v2639_v38  ;;  %v992_v59 = vmax.f32 %v990_v54, %v991_v26  ;;  %v824_v20 = vadd.f32 %v1874_v18, %v2494_v51  ;;  %2070 = vpow2.f32 %v1060_v44 }
 0x22b   : > { %2072 = vpow2.f32 %v1074_v41  ;;  %v1078_v21 = vmul.f32 1.442695, %v1032_v45  ;;  %v2828_v17 = vsel %vm895_vm13, -10000.0, %v809_v32  ;;  %v819_v31 = vadd.f32 %v818_v19, %v2494_v51  ;;  %v2840_v41 = vld [vmem:[%s2489_s15 + $0xf8] sm:$0xff] }
 0x22c   : > { %v1064_v62 = vmul.f32 1.442695, %v3223_v43  ;;  %v1080_v61 = vmul.f32 1.442695, %v1033_v42  ;;  %v993_v34 = vrot.slane %v992_v59, 2  ;;  %v1002_v30 = vsel %vm933_vm1, %v2817_v22, -inf }
 0x22d   : > { %v1000_v38 = vsel %vm933_vm1, %v2828_v17, -inf  ;;  %v1877_v54 = vpop.f32.mrb[30].mxu1  ;;  %2074 = vpow2.f32 %v1076_v37  ;;  %v2837_v45 = vsel %vm897_vm14, -10000.0, %v819_v31  ;;  %3224 = vst [vmem:[#allocation23_spill] sm:$0xff] %v2840_v41  ;;  %v1114_v42 = vsel %vm933_vm1, %v2795_v50, 0.0 }
 0x22e   : > { %v1001_v44 = vmax.f32 %v999_v9, %v1000_v38  ;;  %v828_v26 = vpop.f32.mrb[31].mxu1  ;;  %v994_v18 = vmax.f32 %v992_v59, %v993_v34  ;;  %v2846_v32 = vsel %vm898_vm15, -10000.0, %v824_v20  ;;  %v1004_v19 = vsel %vm933_vm1, %v2837_v45, -inf  ;;  %v2851_v9 = vpop.eup %2060 }
 0x22f   : > { %v829_v37 = vadd.f32 %v828_v26, %v2494_v51  ;;  %2076 = vpow2.f32 %v1078_v21  ;;  %v834_v31 = vadd.f32 %v1877_v54, %v2494_v51  ;;  %v1115_v38 = vsel %vm933_vm1, %v2807_v49, 0.0 }
 0x230   : > { %v1003_v43 = vmax.f32 %v1001_v44, %v1002_v30  ;;  %v2856_v0 = vpop.eup %2062  ;;  %2078 = vpow2.f32 %v1080_v61  ;;  %v995_v59 = vrot.slane %v994_v18, 1  ;;  %vm900_vm2 = vcmp.eq.f32.partialorder %v2840_v41, 0.0 }
 0x231   : > { %v1116_v20 = vadd.f32 %v1115_v38, %v1114_v42  ;;  %v2859_v34 = vpop.eup %2064  ;;  %v1135_v26 = vsel %vm933_vm1, %v2856_v0, 0.0  ;;  %v1006_v21 = vsel %vm933_vm1, %v2846_v32, -inf  ;;  %v1117_v51 = vsel %vm933_vm1, %v2813_v36, 0.0 }
 0x232   : > { %v1005_v30 = vmax.f32 %v1003_v43, %v1004_v19  ;;  %v2867_v54 = vpop.eup %2066  ;;  %v1136_v61 = vsel %vm933_vm1, %v2859_v34, 0.0  ;;  %v996_v44 = vmax.f32 %v994_v18, %v995_v59  ;;  %v2873_v42 = vsel %vm899_vm0, -10000.0, %v829_v37 }
 0x233   : > { %v1118_v38 = vadd.f32 %v1117_v51, %v1116_v20  ;;  %v2875_v41 = vpop.eup %2068  ;;  %2080 = vpow2.f32 %v1064_v62  ;;  %v1137_v24 = vadd.f32 %v1136_v61, %v1135_v26  ;;  %v2877_v11 = vsel %vm900_vm2, -10000.0, %v834_v31 }
 0x234   : > { %v1007_v19 = vmax.f32 %v1005_v30, %v1006_v21  ;;  %v2879_v43 = vpop.eup %2070  ;;  %v1138_v60 = vsel %vm933_vm1, %v2867_v54, 0.0  ;;  %v1034_v8 = vsub.f32 %v2681_v23, %v996_v44  ;;  %v1035_v18 = vsub.f32 %v2662_v3, %v996_v44 }
 0x235   : > { %v1036_v37 = vsub.f32 %v2704_v46, %v996_v44  ;;  %v2886_v59 = vpop.eup %2072  ;;  %v1139_v20 = vadd.f32 %v1138_v60, %v1137_v24  ;;  %v1037_v62 = vsub.f32 %v2700_v6, %v996_v44  ;;  %v1038_v31 = vsub.f32 %v2729_v10, %v996_v44 }
 0x236   : > { %v1008_v26 = vsel %vm933_vm1, %v2873_v42, -inf  ;;  %v1140_v21 = vsel %vm933_vm1, %v2875_v41, 0.0  ;;  %v1039_v30 = vsub.f32 %v2725_v47, %v996_v44  ;;  %v1040_v23 = vsub.f32 %v2753_v13, %v996_v44 }
 0x237   : > { %v1041_v3 = vsub.f32 %v2764_v7, %v996_v44  ;;  %v2897_v46 = vpop.eup %2074  ;;  %v1141_v51 = vadd.f32 %v1140_v21, %v1139_v20  ;;  %v1082_v60 = vmul.f32 1.442695, %v1034_v8  ;;  %v1084_v24 = vmul.f32 1.442695, %v1035_v18 }
 0x238   : > { %v1142_v6 = vsel %vm933_vm1, %v2886_v59, 0.0  ;;  %v1086_v10 = vmul.f32 1.442695, %v1036_v37  ;;  %v1088_v61 = vmul.f32 1.442695, %v1037_v62  ;;  %v1009_v63 = vmax.f32 %v1007_v19, %v1008_v26 }
 0x239   : > { %v2901_v53 = vpop.eup %2076  ;;  %v1143_v35 = vadd.f32 %v1142_v6, %v1141_v51  ;;  %2082 = vpow2.f32 %v1082_v60  ;;  %v1010_v47 = vsel %vm933_vm1, %v2877_v11, -inf  ;;  %v1119_v13 = vsel %vm933_vm1, %v2824_v2, 0.0 }
 0x23a   : > { %v2907_v7 = vpop.eup %2078  ;;  %v1144_v8 = vsel %vm933_vm1, %v2897_v46, 0.0  ;;  %2084 = vpow2.f32 %v1084_v24  ;;  %v1090_v44 = vmul.f32 1.442695, %v1038_v31  ;;  %v1011_v18 = vmax.f32 %v1009_v63, %v1010_v47 }
 0x23b   : > { %v1145_v37 = vadd.f32 %v1144_v8, %v1143_v35  ;;  %2086 = vpow2.f32 %v1086_v10  ;;  %v1120_v19 = vadd.f32 %v1119_v13, %v1118_v38  ;;  %v1121_v20 = vsel %vm933_vm1, %v2851_v9, 0.0 }
 0x23c   : > { %v1146_v62 = vsel %vm933_vm1, %v2901_v53, 0.0  ;;  %2088 = vpow2.f32 %v1088_v61  ;;  %v1092_v26 = vmul.f32 1.442695, %v1039_v30  ;;  %v1012_v21 = vrot.slane %v1011_v18, 4 }
 0x23d   : > { %v2915_v51 = vpop.eup %2080  ;;  %v1147_v60 = vadd.f32 %v1146_v62, %v1145_v37  ;;  %v1122_v6 = vadd.f32 %v1121_v20, %v1120_v19  ;;  %v1123_v31 = vsel %vm933_vm1, %v2879_v43, 0.0  ;;  %v1148_v35 = vsel %vm933_vm1, %v2907_v7, 0.0 }
 0x23e   : > { %2090 = vpow2.f32 %v1090_v44  ;;  %v1094_v63 = vmul.f32 1.442695, %v1040_v23  ;;  %v1013_v38 = vmax.f32 %v1011_v18, %v1012_v21  ;;  %v1125_v61 = vsel %vm933_vm1, %v2790_v48, 0.0 }
 0x23f   : > { %v1149_v24 = vadd.f32 %v1148_v35, %v1147_v60  ;;  %v1124_v10 = vadd.f32 %v1123_v31, %v1122_v6  ;;  %2092 = vpow2.f32 %v1092_v26  ;;  %v1096_v30 = vmul.f32 1.442695, %v1041_v3 }
 0x240   : > { %v1014_v47 = vrot.slane %v1013_v38, 2  ;;  %2094 = vpow2.f32 %v1094_v63  ;;  %v1127_v19 = vsel %vm933_vm1, %v2915_v51, 0.0 }
 0x241   : > { %v1150_v13 = vrot.slane %v1149_v24, 4  ;;  %v1126_v8 = vadd.f32 %v1125_v61, %v1124_v10  ;;  %2096 = vpow2.f32 %v1096_v30 }
 0x242   : > { %v1015_v37 = vmax.f32 %v1013_v38, %v1014_v47 }
 0x243   : > { %v2925_v20 = vpop.eup %2082  ;;  %v1151_v44 = vadd.f32 %v1150_v13, %v1149_v24  ;;  %v1128_v23 = vadd.f32 %v1127_v19, %v1126_v8 }
 0x244   : > { %v2927_v18 = vpop.eup %2084  ;;  %v1156_v62 = vsel %vm933_vm1, %v2925_v20, 0.0  ;;  %v1016_v26 = vrot.slane %v1015_v37, 1 }
 0x245   : > { %v2931_v3 = vpop.eup %2086  ;;  %v1152_v21 = vrot.slane %v1151_v44, 2  ;;  %v1157_v60 = vsel %vm933_vm1, %v2927_v18, 0.0  ;;  %v1129_v63 = vrot.slane %v1128_v23, 4 }
 0x246   : > { %v2935_v6 = vpop.eup %2088  ;;  %v1158_v31 = vadd.f32 %v1157_v60, %v1156_v62  ;;  %v1017_v35 = vmax.f32 %v1015_v37, %v1016_v26  ;;  %v1159_v24 = vsel %vm933_vm1, %v2931_v3, 0.0 }
 0x247   : > { %v1153_v38 = vadd.f32 %v1152_v21, %v1151_v44  ;;  %v1161_v8 = vsel %vm933_vm1, %v2935_v6, 0.0  ;;  %v1130_v60 = vadd.f32 %v1129_v63, %v1128_v23 }
 0x248   : > { %v2939_v10 = vpop.eup %2090  ;;  %v1160_v61 = vadd.f32 %v1159_v24, %v1158_v31  ;;  %v1042_v30 = vsub.f32 %v2803_v33, %v1017_v35  ;;  %v1043_v47 = vsub.f32 %v2799_v27, %v1017_v35  ;;  %v1044_v19 = vsub.f32 %v2828_v17, %v1017_v35 }
 0x249   : > { %v1154_v13 = vrot.slane %v1153_v38, 1  ;;  %v1045_v37 = vsub.f32 %v2817_v22, %v1017_v35  ;;  %v2947_v62 = vpop.eup %2092  ;;  %v1046_v26 = vsub.f32 %v2837_v45, %v1017_v35  ;;  %v1047_v21 = vsub.f32 %v2846_v32, %v1017_v35 }
 0x24a   : > { %v1162_v44 = vadd.f32 %v1161_v8, %v1160_v61  ;;  %v1163_v27 = vsel %vm933_vm1, %v2939_v10, 0.0  ;;  %v1048_v33 = vsub.f32 %v2873_v42, %v1017_v35  ;;  %v1049_v24 = vsub.f32 %v2877_v11, %v1017_v35  ;;  %v2955_v29 = vpop.eup %2094 }
 0x24b   : > { %v1155_v31 = vadd.f32 %v1154_v13, %v1153_v38  ;;  %v1098_v22 = vmul.f32 1.442695, %v1042_v30  ;;  %v1100_v12 = vmul.f32 1.442695, %v1043_v47  ;;  %v1102_v1 = vmul.f32 1.442695, %v1044_v19  ;;  %v2959_v23 = vpop.eup %2096 }
 0x24c   : > { %v1164_v17 = vadd.f32 %v1163_v27, %v1162_v44  ;;  %v1165_v45 = vsel %vm933_vm1, %v2947_v62, 0.0  ;;  %v1104_v32 = vmul.f32 1.442695, %v1045_v37  ;;  %v1167_v42 = vsel %vm933_vm1, %v2955_v29, 0.0 }
 0x24d   : > { %2098 = vrcp.f32 %v1155_v31  ;;  %v1106_v11 = vmul.f32 1.442695, %v1046_v26  ;;  %v1131_v35 = vrot.slane %v1130_v60, 2  ;;  %v1108_v61 = vmul.f32 1.442695, %v1047_v21 }
 0x24e   : > { %v1166_v63 = vadd.f32 %v1165_v45, %v1164_v17  ;;  %2100 = vpow2.f32 %v1098_v22  ;;  %v1169_v30 = vsel %vm933_vm1, %v2959_v23, 0.0  ;;  %v1110_v47 = vmul.f32 1.442695, %v1048_v33 }
 0x24f   : > { %2102 = vpow2.f32 %v1100_v12  ;;  %v1132_v13 = vadd.f32 %v1131_v35, %v1130_v60  ;;  %v1112_v19 = vmul.f32 1.442695, %v1049_v24 }
 0x250   : > { %v1168_v38 = vadd.f32 %v1167_v42, %v1166_v63  ;;  %2104 = vpow2.f32 %v1102_v1 }
 0x251   : > { %2106 = vpow2.f32 %v1104_v32  ;;  %v1133_v37 = vrot.slane %v1132_v13, 1 }
 0x252   : > { %v1170_v8 = vadd.f32 %v1169_v30, %v1168_v38  ;;  %2108 = vpow2.f32 %v1106_v11 }
 0x253   : > { %2110 = vpow2.f32 %v1108_v61  ;;  %v1134_v31 = vadd.f32 %v1133_v37, %v1132_v13 }
 0x254   : > { %v1171_v44 = vrot.slane %v1170_v8, 4  ;;  %2112 = vpow2.f32 %v1110_v47 }
 0x255   : > { %2114 = vpow2.f32 %v1112_v19 }
 0x256   : > { %v1172_v12 = vadd.f32 %v1171_v44, %v1170_v8  ;;  %2116 = vrcp.f32 %v1134_v31 }
 0x257   : > { %v2099_v26 = vpop.eup %2098 }
 0x258   : > { %v2965_v1 = vpop.eup %2100  ;;  %v1173_v21 = vrot.slane %v1172_v12, 2  ;;  %v2968_v27 = vmul.f32 %v2099_v26, %v2859_v34  ;;  %v2971_v60 = vmul.f32 %v2099_v26, %v2856_v0  ;;  %v2974_v33 = vmul.f32 %v2099_v26, %v2875_v41 }
 0x259   : > { %v2976_v24 = vpop.eup %2102  ;;  %v1177_v17 = vsel %vm933_vm1, %v2965_v1, 0.0  ;;  %v2981_v22 = vmul.f32 %v2099_v26, %v2867_v54  ;;  %v2984_v45 = vmul.f32 %v2099_v26, %v2897_v46  ;;  %v2987_v34 = vmul.f32 %v2099_v26, %v2886_v59 }
 0x25a   : > { %v2989_v32 = vpop.eup %2104  ;;  %v1174_v0 = vadd.f32 %v1173_v21, %v1172_v12  ;;  %v1178_v41 = vsel %vm933_vm1, %v2976_v24, 0.0  ;;  %v3000_v38 = vmul.f32 %v2099_v26, %v2907_v7  ;;  %v3003_v59 = vmul.f32 %v2099_v26, %v2901_v53 }
 0x25b   : > { %v2993_v63 = vpop.eup %2106  ;;  %v1179_v42 = vadd.f32 %v1178_v41, %v1177_v17  ;;  %v1180_v54 = vsel %vm933_vm1, %v2989_v32, 0.0 }
 0x25c   : > { %v1175_v11 = vrot.slane %v1174_v0, 1  ;;  %v2997_v35 = vpop.eup %2108  ;;  %v1182_v47 = vsel %vm933_vm1, %v2993_v63, 0.0 }
 0x25d   : > { %v1181_v46 = vadd.f32 %v1180_v54, %v1179_v42  ;;  %v3005_v61 = vpop.eup %2110  ;;  %v1184_v37 = vsel %vm933_vm1, %v2997_v35, 0.0 }
 0x25e   : > { %v1176_v30 = vadd.f32 %v1175_v11, %v1174_v0  ;;  %v3009_v13 = vpop.eup %2112  ;;  %v1186_v53 = vsel %vm933_vm1, %v3005_v61, 0.0 }
 0x25f   : > { %v1183_v8 = vadd.f32 %v1182_v47, %v1181_v46  ;;  %v3011_v19 = vpop.eup %2114  ;;  %v1188_v11 = vsel %vm933_vm1, %v3009_v13, 0.0 }
 0x260   : > { %2118 = vrcp.f32 %v1176_v30  ;;  %v2117_v7 = vpop.eup %2116 }
 0x261   : > { %v1185_v44 = vadd.f32 %v1184_v37, %v1183_v8  ;;  %v1204_v31 = vmul.f32 %v2117_v7, %v2813_v36  ;;  %v1202_v12 = vmul.f32 %v2117_v7, %v2795_v50  ;;  %v1205_v26 = vmul.f32 %v2117_v7, %v2824_v2 }
 0x262   : > { %v1203_v21 = vmul.f32 %v2117_v7, %v2807_v49  ;;  %v1207_v0 = vmul.f32 %v2117_v7, %v2879_v43  ;;  %v1206_v41 = vmul.f32 %v2117_v7, %v2851_v9  ;;  %v1209_v42 = vmul.f32 %v2117_v7, %v2915_v51 }
 0x263   : > { %v1187_v17 = vadd.f32 %v1186_v53, %v1185_v44  ;;  %v1236_v54 = vmul.f32 %v1204_v31, %v2507_v58  ;;  %v1234_v36 = vmul.f32 %v1202_v12, %v2497_v52  ;;  %v1190_v50 = vsel %vm933_vm1, %v3011_v19, 0.0  ;;  %v3228_v12 = vld [vmem:[#allocation9_spill] sm:$0xff] }
 0x264   : > { %v1208_v2 = vmul.f32 %v2117_v7, %v2790_v48  ;;  %v1237_v9 = vmul.f32 %v1205_v26, %v2504_v57  ;;  %v1235_v43 = vmul.f32 %v1203_v21, %v2492_v16  ;;  %v1239_v58 = vmul.f32 %v1207_v0, %v2522_v4  ;;  %v3230_v26 = vld [vmem:[#allocation10_spill] sm:$0xff]  ;;  %v3232_v21 = vld [vmem:[#allocation12_spill] sm:$0xff]  ;;  %v3234_v0 = vld [vmem:[#allocation15_spill] sm:$0xff] }
 0x265   : > { %v1189_v46 = vadd.f32 %v1188_v11, %v1187_v17  ;;  %1278 = vperm.xlu1 %1985, %v1236_v54   ;;  %1268 = vperm.xlu0 %1984, %v1234_v36   ;;  %v1238_v52 = vmul.f32 %v1206_v41, %v2525_v5  ;;  %v3236_v54 = vld [vmem:[#allocation19_spill] sm:$0xff] }
 0x267   : > { %v1191_v49 = vadd.f32 %v1190_v50, %v1189_v46  ;;  %v3237_v46 = vld [vmem:[#allocation18_spill] sm:$0xff] }
 0x269   : > { %v1192_v51 = vrot.slane %v1191_v49, 4  ;;  %1283 = vperm.xlu1 %1985, %v1237_v9   ;;  %1273 = vperm.xlu0 %1984, %v1235_v43   ;;  %v3239_v9 = vld [vmem:[#allocation21_spill] sm:$0xff] }
 0x26a   : > { %v2119_v30 = vpop.eup %2118 }
 0x26b   : > { %v1193_v47 = vadd.f32 %v1192_v51, %v1191_v49  ;;  %v1219_v8 = vmul.f32 %v2119_v30, %v2927_v18  ;;  %v1218_v37 = vmul.f32 %v2119_v30, %v2925_v20  ;;  %v1220_v48 = vmul.f32 %v2119_v30, %v2931_v3  ;;  %v3240_v51 = vld [vmem:[#allocation22_spill] sm:$0xff] }
 0x26c   : > { %v1221_v7 = vmul.f32 %v2119_v30, %v2935_v6  ;;  %v1222_v57 = vmul.f32 %v2119_v30, %v2939_v10  ;;  %v1223_v16 = vmul.f32 %v2119_v30, %v2947_v62  ;;  %v1224_v44 = vmul.f32 %v2119_v30, %v2955_v29  ;;  %v3225_v62 = vld [vmem:[#allocation6_spill] sm:$0xff] }
 0x26d   : > { %v1194_v53 = vrot.slane %v1193_v47, 2  ;;  %1293 = vperm.xlu1 %1985, %v1239_v58   ;;  %1288 = vperm.xlu0 %1984, %v1238_v52   ;;  %v1225_v5 = vmul.f32 %v2119_v30, %v2959_v23  ;;  %v1241_v18 = vmul.f32 %v1209_v42, %v2538_v14  ;;  %v1240_v20 = vmul.f32 %v1208_v2, %v2541_v15  ;;  %v3235_v42 = vld [vmem:[#allocation16_spill] sm:$0xff]  ;;  %v3241_v58 = vld [vmem:[#allocation23_spill] sm:$0xff] }
 0x26e   : > { %v1243_v3 = vmul.f32 %v2968_v27, %v2555_v25  ;;  %v1242_v6 = vmul.f32 %v2971_v60, %v2559_v28  ;;  %v1245_v10 = vmul.f32 %v2974_v33, %v2574_v39  ;;  %v1244_v14 = vmul.f32 %v2981_v22, %v2577_v40  ;;  %v3226_v27 = vld [vmem:[#allocation7_spill] sm:$0xff]  ;;  %v3238_v2 = vld [vmem:[#allocation20_spill] sm:$0xff] }
 0x26f   : > { %v1195_v4 = vadd.f32 %v1194_v53, %v1193_v47  ;;  %v1247_v15 = vmul.f32 %v2984_v45, %v2594_v55  ;;  %v1246_v25 = vmul.f32 %v2987_v34, %v2597_v56  ;;  %v1249_v23 = vmul.f32 %v3000_v38, %v3225_v62  ;;  %v3227_v38 = vld [vmem:[#allocation8_spill] sm:$0xff]  ;;  %v3242_v47 = vld [vmem:[#allocation14_spill] sm:$0xff] }
 0x270   : > { %v1248_v39 = vmul.f32 %v3003_v59, %v3226_v27  ;;  %v1251_v59 = vmul.f32 %v1219_v8, %v3227_v38  ;;  %v1256_v41 = vmul.f32 %v1224_v44, %v3234_v0  ;;  %v1257_v8 = vmul.f32 %v1225_v5, %v3242_v47  ;;  %v2123_v53 = vld [vmem:[%s2347_s19 + $0x8] sm:$0xff]  ;;  %v2125_v5 = vld [vmem:[%s2347_s19 + $0x18] sm:$0xff] }
 0x271   : > { %v1196_v31 = vrot.slane %v1195_v4, 1  ;;  %1303 = vperm.xlu1 %1985, %v1241_v18   ;;  %1298 = vperm.xlu0 %1984, %v1240_v20   ;;  %v2124_v18 = vld [vmem:[%s2347_s19 + $0x10] sm:$0xff]  ;;  %v2130_v38 = vld [vmem:[%s2347_s19 + $0x48] sm:$0xff] }
 0x273   : > { %v1197_v29 = vadd.f32 %v1196_v31, %v1195_v4 }
 0x275   : > { %2120 = vrcp.f32 %v1197_v29  ;;  %1313 = vperm.xlu1 %1985, %v1243_v3   ;;  %1308 = vperm.xlu0 %1984, %v1242_v6  }
 0x279   : > { %1323 = vperm.xlu1 %1985, %v1245_v10   ;;  %1318 = vperm.xlu0 %1984, %v1244_v14  }
 0x27d   : > { %1333 = vperm.xlu1 %1985, %v1247_v15   ;;  %1328 = vperm.xlu0 %1984, %v1246_v25   ;;  %v2126_v15 = vld [vmem:[%s2347_s19 + $0x20] sm:$0xff] }
 0x27f   : > { %v2121_v28 = vpop.eup %2120 }
 0x280   : > { %v1227_v60 = vmul.f32 %v2121_v28, %v2976_v24  ;;  %v1226_v40 = vmul.f32 %v2121_v28, %v2965_v1  ;;  %v1229_v33 = vmul.f32 %v2121_v28, %v2993_v63  ;;  %v1228_v55 = vmul.f32 %v2121_v28, %v2989_v32  ;;  %v3229_v1 = vld [vmem:[#allocation11_spill] sm:$0xff] }
 0x281   : > { %v1231_v22 = vmul.f32 %v2121_v28, %v3005_v61  ;;  %v1230_v56 = vmul.f32 %v2121_v28, %v2997_v35  ;;  %v1233_v45 = vmul.f32 %v2121_v28, %v3011_v19  ;;  %v1232_v34 = vmul.f32 %v2121_v28, %v3009_v13  ;;  %1343 = vperm.xlu1 %1985, %v1249_v23   ;;  %v3231_v61 = vld [vmem:[#allocation13_spill] sm:$0xff]  ;;  %v2127_v23 = vld [vmem:[%s2347_s19 + $0x28] sm:$0xff] }
 0x282   : > { %1338 = vperm.xlu0 %1984, %v1248_v39   ;;  %v1250_v24 = vmul.f32 %v1218_v37, %v3228_v12  ;;  %v1252_v63 = vmul.f32 %v1220_v48, %v3229_v1  ;;  %v1253_v32 = vmul.f32 %v1221_v7, %v3230_v26  ;;  %v1254_v35 = vmul.f32 %v1222_v57, %v3231_v61  ;;  %v3233_v13 = vld [vmem:[#allocation17_spill] sm:$0xff] }
 0x283   : > { %v1255_v19 = vmul.f32 %v1223_v16, %v3232_v21  ;;  %v1258_v17 = vmul.f32 %v1226_v40, %v3233_v13  ;;  %v1259_v11 = vmul.f32 %v1227_v60, %v3235_v42  ;;  %v1260_v36 = vmul.f32 %v1228_v55, %v3236_v54  ;;  %v2122_v16 = vld [vmem:[%s2347_s19] sm:$0xff]  ;;  %v2128_v40 = vld [vmem:[%s2347_s19 + $0x30] sm:$0xff]  ;;  %v2133_v13 = vld [vmem:[%s2347_s19 + $0x58] sm:$0xff] }
 0x284   : > { %v1261_v50 = vmul.f32 %v1229_v33, %v3237_v46  ;;  %v1262_v49 = vmul.f32 %v1230_v56, %v3238_v2  ;;  %v1263_v43 = vmul.f32 %v1231_v22, %v3239_v9  ;;  %v1264_v30 = vmul.f32 %v1232_v34, %v3240_v51  ;;  %v2129_v56 = vld [vmem:[%s2347_s19 + $0x38] sm:$0xff]  ;;  %v2131_v12 = vld [vmem:[%s2347_s19 + $0x40] sm:$0xff]  ;;  %v2135_v2 = vld [vmem:[%s2347_s19 + $0x68] sm:$0xff] }
 0x285   : > { %1353 = vperm.xlu1 %1985, %v1251_v59   ;;  %v1265_v52 = vmul.f32 %v1233_v45, %v3241_v58 }
 0x286   : > { %1348 = vperm.xlu0 %1984, %v1250_v24  }
 0x289   : > { %1358 = vperm.xlu1 %1985, %v1252_v63  }
 0x28a   : > { %1363 = vperm.xlu0 %1984, %v1253_v32  }
 0x28d   : > { %1368 = vperm.xlu1 %1985, %v1254_v35   ;;  %v2132_v35 = vld [vmem:[%s2347_s19 + $0x50] sm:$0xff] }
 0x28e   : > { %1373 = vperm.xlu0 %1984, %v1255_v19  }
 0x291   : > { %1378 = vperm.xlu1 %1985, %v1256_v41  }
 0x292   : > { %1388 = vperm.xlu0 %1984, %v1258_v17  }
 0x295   : > { %1393 = vperm.xlu1 %1985, %v1259_v11  }
 0x296   : > { %1398 = vperm.xlu0 %1984, %v1260_v36   ;;  %v2134_v36 = vld [vmem:[%s2347_s19 + $0x60] sm:$0xff] }
 0x299   : > { %1403 = vperm.xlu1 %1985, %v1261_v50  }
 0x29a   : > { %1408 = vperm.xlu0 %1984, %v1262_v49  }
 0x29d   : > { %1413 = vperm.xlu1 %1985, %v1263_v43  }
 0x29e   : > { %1418 = vperm.xlu0 %1984, %v1264_v30  }
 0x2a1   : > { %1423 = vperm.xlu1 %1985, %v1265_v52   ;;  %v2136_v52 = vld [vmem:[%s2347_s19 + $0x70] sm:$0xff] }
 0x2a2   : > { %1383 = vperm.xlu0 %1984, %v1257_v8  }
 0x2e4   : > { %v1279_v37 = vpop.permute.xlu1 %1278  ;;  %v1269_v48 = vpop.permute.xlu0 %1268 }
 0x2e5   : > { %v1426_v44 = vmul.f32 %v2122_v16, %v1269_v48  ;;  %v1428_v20 = vmul.f32 %v2124_v18, %v1279_v37  ;;  %v2137_v37 = vld [vmem:[%s2347_s19 + $0x78] sm:$0xff] }
 0x2e8   : > { %v1284_v7 = vpop.permute.xlu1 %1283  ;;  %v1274_v57 = vpop.permute.xlu0 %1273 }
 0x2e9   : > { %v1427_v4 = vmul.f32 %v2123_v53, %v1274_v57  ;;  %v1429_v29 = vmul.f32 %v2125_v5, %v1284_v7 }
 0x2eb   : > { %v1458_v31 = vadd.f32 %v1427_v4, %v1426_v44 }
 0x2ec   : > { %v1294_v3 = vpop.permute.xlu1 %1293  ;;  %v1289_v6 = vpop.permute.xlu0 %1288 }
 0x2ed   : > { %v1459_v10 = vadd.f32 %v1458_v31, %v1428_v20  ;;  %v1430_v25 = vmul.f32 %v2126_v15, %v1289_v6  ;;  %v1431_v27 = vmul.f32 %v2127_v23, %v1294_v3  ;;  %v2138_v31 = vld [vmem:[%s2347_s19 + $0x88] sm:$0xff]  ;;  %v2139_v6 = vld [vmem:[%s2347_s19 + $0x80] sm:$0xff] }
 0x2ef   : > { %v1460_v14 = vadd.f32 %v1459_v10, %v1429_v29  ;;  %v2140_v10 = vld [vmem:[%s2347_s19 + $0x90] sm:$0xff] }
 0x2f0   : > { %v1304_v28 = vpop.permute.xlu1 %1303  ;;  %v1299_v62 = vpop.permute.xlu0 %1298 }
 0x2f1   : > { %v1461_v39 = vadd.f32 %v1460_v14, %v1430_v25  ;;  %v1432_v33 = vmul.f32 %v2128_v40, %v1299_v62  ;;  %v1433_v45 = vmul.f32 %v2129_v56, %v1304_v28 }
 0x2f3   : > { %v1462_v60 = vadd.f32 %v1461_v39, %v1431_v27 }
 0x2f4   : > { %v1314_v55 = vpop.permute.xlu1 %1313  ;;  %v1309_v22 = vpop.permute.xlu0 %1308 }
 0x2f5   : > { %v1463_v34 = vadd.f32 %v1462_v60, %v1432_v33  ;;  %v1435_v59 = vmul.f32 %v2130_v38, %v1314_v55  ;;  %v1434_v24 = vmul.f32 %v2131_v12, %v1309_v22  ;;  %v2141_v33 = vld [vmem:[%s2347_s19 + $0x98] sm:$0xff]  ;;  %v2142_v22 = vld [vmem:[%s2347_s19 + $0xc0] sm:$0xff] }
 0x2f7   : > { %v1464_v1 = vadd.f32 %v1463_v34, %v1433_v45  ;;  %v1471_v61 = vadd.f32 %v1435_v59, %v1434_v24  ;;  %v2143_v34 = vld [vmem:[%s2347_s19 + $0xa0] sm:$0xff]  ;;  %v2144_v24 = vld [vmem:[%s2347_s19 + $0xc8] sm:$0xff] }
 0x2f8   : > { %v1324_v63 = vpop.permute.xlu1 %1323  ;;  %v1319_v26 = vpop.permute.xlu0 %1318 }
 0x2f9   : > { %v1465_v32 = vrot.slane %v1464_v1, 4  ;;  %v1436_v21 = vmul.f32 %v2132_v35, %v1319_v26  ;;  %v1437_v17 = vmul.f32 %v2133_v13, %v1324_v63  ;;  %v2145_v63 = vld [vmem:[%s2347_s19 + $0xd0] sm:$0xff] }
 0x2fb   : > { %v1466_v19 = vadd.f32 %v1465_v32, %v1464_v1  ;;  %v1472_v0 = vadd.f32 %v1471_v61, %v1436_v21 }
 0x2fc   : > { %v1334_v41 = vpop.permute.xlu1 %1333  ;;  %v1329_v42 = vpop.permute.xlu0 %1328 }
 0x2fd   : > { %v1467_v11 = vrot.slane %v1466_v19, 2  ;;  %v1473_v54 = vadd.f32 %v1472_v0, %v1437_v17  ;;  %v1438_v46 = vmul.f32 %v2134_v36, %v1329_v42  ;;  %v1439_v49 = vmul.f32 %v2135_v2, %v1334_v41  ;;  %v2147_v0 = vld [vmem:[%s2347_s19 + $0xe0] sm:$0xff]  ;;  %v2148_v42 = vld [vmem:[%s2347_s19 + $0xa8] sm:$0xff]  ;;  %v2149_v2 = vld [vmem:[%s2347_s19 + $0xb0] sm:$0xff] }
 0x2ff   : > { %v1468_v50 = vadd.f32 %v1467_v11, %v1466_v19  ;;  %v1474_v9 = vadd.f32 %v1473_v54, %v1438_v46  ;;  %v2146_v19 = vld [vmem:[%s2347_s19 + $0xd8] sm:$0xff] }
 0x300   : > { %v1344_v43 = vpop.permute.xlu1 %1343 }
 0x301   : > { %v1339_v51 = vpop.permute.xlu0 %1338  ;;  %v1469_v30 = vrot.slane %v1468_v50, 1  ;;  %v1475_v58 = vadd.f32 %v1474_v9, %v1439_v49  ;;  %v1441_v48 = vmul.f32 %v2137_v37, %v1344_v43  ;;  %v2150_v9 = vld [vmem:[%s2347_s19 + $0xe8] sm:$0xff] }
 0x302   : > { %v1440_v47 = vmul.f32 %v2136_v52, %v1339_v51 }
 0x303   : > { %v1470_v8 = vadd.f32 %v1469_v30, %v1468_v50  ;;  %v2151_v30 = vld [vmem:[%s2347_s19 + $0xf0] sm:$0xff] }
 0x304   : > { %v1476_v7 = vadd.f32 %v1475_v58, %v1440_v47  ;;  %v1354_v57 = vpop.permute.xlu1 %1353 }
 0x305   : > { %v1349_v16 = vpop.permute.xlu0 %1348  ;;  %1510 = vst [vmem:[%s3104_s17] sm:$0x1] %v1470_v8  ;;  %v1443_v3 = vmul.f32 %v2138_v31, %v1354_v57 }
 0x306   : > { %v1477_v44 = vadd.f32 %v1476_v7, %v1441_v48  ;;  %v1442_v5 = vmul.f32 %v2139_v6, %v1349_v16  ;;  %v2152_v48 = vld [vmem:[%s2347_s19 + $0xf8] sm:$0xff] }
 0x307   : > { %v2153_v16 = vld [vmem:[%s2347_s19 + $0xb8] sm:$0xff] }
 0x308   : > { %v1478_v53 = vrot.slane %v1477_v44, 4  ;;  %v1359_v4 = vpop.permute.xlu1 %1358  ;;  %v1484_v62 = vadd.f32 %v1443_v3, %v1442_v5 }
 0x309   : > { %v1364_v18 = vpop.permute.xlu0 %1363  ;;  %v1444_v14 = vmul.f32 %v2140_v10, %v1359_v4 }
 0x30a   : > { %v1479_v20 = vadd.f32 %v1478_v53, %v1477_v44  ;;  %v1445_v55 = vmul.f32 %v2141_v33, %v1364_v18 }
 0x30b   : > { %v1485_v27 = vadd.f32 %v1484_v62, %v1444_v14 }
 0x30c   : > { %v1480_v29 = vrot.slane %v1479_v20, 2  ;;  %v1369_v15 = vpop.permute.xlu1 %1368 }
 0x30d   : > { %v1374_v25 = vpop.permute.xlu0 %1373  ;;  %v1486_v45 = vadd.f32 %v1485_v27, %v1445_v55  ;;  %v1446_v38 = vmul.f32 %v2143_v34, %v1369_v15 }
 0x30e   : > { %v1481_v28 = vadd.f32 %v1480_v29, %v1479_v20  ;;  %v1447_v11 = vmul.f32 %v2148_v42, %v1374_v25 }
 0x30f   : > { %v1487_v61 = vadd.f32 %v1486_v45, %v1446_v38 }
 0x310   : > { %v1482_v23 = vrot.slane %v1481_v28, 1  ;;  %v1379_v39 = vpop.permute.xlu1 %1378 }
 0x311   : > { %v1389_v60 = vpop.permute.xlu0 %1388  ;;  %v1488_v36 = vadd.f32 %v1487_v61, %v1447_v11  ;;  %v1448_v49 = vmul.f32 %v2149_v2, %v1379_v39 }
 0x312   : > { %v1483_v40 = vadd.f32 %v1482_v23, %v1481_v28  ;;  %v1450_v56 = vmul.f32 %v2142_v22, %v1389_v60 }
 0x313   : > { %v1489_v37 = vadd.f32 %v1488_v36, %v1448_v49 }
 0x314   : > { %1511 = vst [vmem:[%s3104_s17 + $0x1] sm:$0x1] %v1483_v40  ;;  %v1394_v59 = vpop.permute.xlu1 %1393 }
 0x315   : > { %v1399_v12 = vpop.permute.xlu0 %1398  ;;  %v1451_v1 = vmul.f32 %v2144_v24, %v1394_v59 }
 0x316   : > { %v1452_v26 = vmul.f32 %v2145_v63, %v1399_v12 }
 0x317   : > { %v1497_v32 = vadd.f32 %v1451_v1, %v1450_v56 }
 0x318   : > { %v1404_v35 = vpop.permute.xlu1 %1403 }
 0x319   : > { %v1409_v21 = vpop.permute.xlu0 %1408  ;;  %v1453_v13 = vmul.f32 %v2146_v19, %v1404_v35  ;;  %v1498_v17 = vadd.f32 %v1497_v32, %v1452_v26 }
 0x31a   : > { %v1454_v41 = vmul.f32 %v2147_v0, %v1409_v21 }
 0x31b   : > { %v1499_v54 = vadd.f32 %v1498_v17, %v1453_v13 }
 0x31c   : > { %v1414_v46 = vpop.permute.xlu1 %1413 }
 0x31d   : > { %v1419_v50 = vpop.permute.xlu0 %1418  ;;  %v1455_v43 = vmul.f32 %v2150_v9, %v1414_v46  ;;  %v1500_v51 = vadd.f32 %v1499_v54, %v1454_v41 }
 0x31e   : > { %v1456_v58 = vmul.f32 %v2151_v30, %v1419_v50 }
 0x31f   : > { %v1501_v52 = vadd.f32 %v1500_v51, %v1455_v43 }
 0x320   : > { %v1424_v47 = vpop.permute.xlu1 %1423 }
 0x321   : > { %v1384_v8 = vpop.permute.xlu0 %1383  ;;  %v1457_v7 = vmul.f32 %v2152_v48, %v1424_v47  ;;  %v1502_v57 = vadd.f32 %v1501_v52, %v1456_v58 }
 0x322   : > { %v1449_v44 = vmul.f32 %v2153_v16, %v1384_v8 }
 0x323   : > { %v1503_v53 = vadd.f32 %v1502_v57, %v1457_v7 }
 0x324   : > { %v1490_v4 = vadd.f32 %v1489_v37, %v1449_v44 }
 0x325   : > { %v1504_v18 = vrot.slane %v1503_v53, 4 }
 0x326   : > { %v1491_v20 = vrot.slane %v1490_v4, 4 }
 0x327   : > { %v1505_v31 = vadd.f32 %v1504_v18, %v1503_v53 }
 0x328   : > { %v1492_v3 = vadd.f32 %v1491_v20, %v1490_v4 }
 0x329   : > { %v1506_v6 = vrot.slane %v1505_v31, 2 }
 0x32a   : > { %v1493_v5 = vrot.slane %v1492_v3, 2 }
 0x32b   : > { %v1507_v29 = vadd.f32 %v1506_v6, %v1505_v31 }
 0x32c   : > { %v1494_v10 = vadd.f32 %v1493_v5, %v1492_v3 }
 0x32d   : > { %v1508_v14 = vrot.slane %v1507_v29, 1 }
 0x32e   : > { %v1495_v15 = vrot.slane %v1494_v10, 1 }
 0x32f   : > { %v1509_v25 = vadd.f32 %v1508_v14, %v1507_v29 }
 0x330   : > { %v1496_v28 = vadd.f32 %v1495_v15, %v1494_v10 }
 0x331   : > { %1513 = vst [vmem:[%s3104_s17 + $0x3] sm:$0x1] %v1509_v25 }
 0x332   : > { %1512 = vst [vmem:[%s3104_s17 + $0x2] sm:$0x1] %v1496_v28 }
 0x333   : > { %2167 = shalt.err (!%p2164_p3)
}
 0x334   : > { %s2168_s12 = scalar_lea.hbm %s3129_s22, 64  ;;  %s2172_s15 = scalar_lea.hbm %s3184_s6, 256 }
 0x335   : > { %p2169_p4 = scmp.ne.s32.totalorder %s3129_s22, %s2168_s12  ;;  %p2173_p9 = scmp.lt.u32.totalorder %s3129_s22, %s3184_s6 }
 0x336   : > { %p2174_p10 = scmp.lt.u32.totalorder %s2172_s15, %s2168_s12  ;;  %p2176_p12 = scmp.lt.u32.totalorder %s2168_s12, %s3129_s22 }
 0x337   : > { %p2170_p7 = pnand %p2169_p4, %p2298_p5 }
 0x338   : > { %p2175_p11 = por %p2174_p10, %p2173_p9 }
 0x339   : > { %p2171_p8 = pneg %p2170_p7 }
 0x33a   : > { %p2177_p13 = por %p2176_p12, %p2175_p11 }
 0x33c   : > { %p2178_p0 = pnand %p2177_p13, %p2171_p8 }
 0x33e   : > { %2181 = shalt.err (!%p2178_p0)
}
 0x33f   : > { %s2220_s17 = smov 16   ;;  %s2221_s18 = smov 1  }
 0x340   : > { %1942 = dma.vmem_to_hbm [thread:$0]  (%p2298_p5), %s3131_s20, 64, %s3129_s22, %s3137_s27, %s2220_s17, %s2220_s17, %s2221_s18  }
 0x341 PF: > { %p1948_p1 = scmp.ge.s32.totalorder %s2216_s26, 2  ;;  %s1543_s19 = sand.u32 1, %s2204_s23  }
 0x342   : > { %s1544_s21 = scalar_lea.sflag [#allocation4], %s1543_s19 }
 0x343   : > { %p1945_p2 = pnand %p1948_p1, %p2302_p6 }
 0x345   : > { %2199 = dma.done.wait (!%p1945_p2), %s1544_s21, 64  }
 0x346   : > { %2201 = vsyncadd (!%p1945_p2), %s1544_s21, 4294967232  ;;  %p17_p3 = scmp.ge.s32.totalorder %s2285_s28, 6   ;;  %s3243_s23 = smov %s2208_s24 }
 0x347   : > { %s3244_s24 = smov %s2212_s25  ;;  %s3245_s25 = smov %s2296_s7 }
 0x348   : > { %s3246_s26 = smov %s2285_s28  ;;  %19 = sbr.rel (!%p17_p3) target bundleno = 5 (0x5), region = 82 }
 0x34f   :  { %1549 = vsyncpa [#allocation4], 1 }
 0x350   :  { %1551 = vsyncpa [#allocation4 + $0x1], 1 }

</bundles_post_ra>
